<compile_context>
chip_gen: v7x
topology: tpu7x:2x2x1
jax: 0.10.0
libtpu: 0.0.40
codegen_flags: <defaults>
</compile_context>

<pallas_src>
import functools

import jax
import jax.numpy as jnp
from jax.experimental import pallas as pl
from jax.experimental.pallas import tpu as pltpu


# ---------------------------------------------------------------------------
# Fused Pallas kernel: conv0 (7x7/s2/p3) + ReLU + global avg pool + Linear (+Sigmoid)
# ---------------------------------------------------------------------------
def _chex_fused_kernel(x_ref, w_ref, fcw_ref, fcb_ref, o_ref, pooled_ref, *,
                       wo, row_tile, use_sig, inv_p):
    """Per grid step: one image (axis 0, parallel) x one tile of output rows (axis 1).

    x_ref   : (1, Ho+3, Wo+3, 4*Cin)  bf16   space-to-depth padded input (resident per image)
    w_ref   : (16, 4*Cin, Cout)       bf16   conv taps (di*4+dj ordering)
    fcw_ref : (Cout, n_class)         f32
    fcb_ref : (1, n_class)            f32
    o_ref   : (1, 1, n_class)         f32
    pooled_ref (scratch): (1, Cout)   f32    running spatial sum of ReLU(conv)
    """
    j = pl.program_id(1)

    @pl.when(j == 0)
    def _init():
        pooled_ref[...] = jnp.zeros_like(pooled_ref)

    cout = w_ref.shape[-1]
    h0 = j * row_tile
    part = jnp.zeros((1, cout), jnp.float32)
    for r in range(row_tile):                       # static unroll over the row tile
        acc = jnp.zeros((wo, cout), jnp.float32)
        for di in range(4):                         # 16 conv taps of the s2d 4x4 conv
            for dj in range(4):
                xs = x_ref[0, h0 + r + di, pl.ds(dj, wo), :]        # (wo, 4*Cin) bf16
                acc = acc + jnp.dot(xs, w_ref[di * 4 + dj],
                                    preferred_element_type=jnp.float32)
        acc = jnp.maximum(acc, 0.0)                 # fused ReLU (f32)
        part = part + jnp.sum(acc, axis=0, keepdims=True)
    pooled_ref[...] += part

    @pl.when(j == pl.num_programs(1) - 1)
    def _finalize():
        pooled = pooled_ref[...] * inv_p            # adaptive_avg_pool2d((1,1)) + flatten
        logits = jnp.dot(pooled, fcw_ref[...],
                         preferred_element_type=jnp.float32) + fcb_ref[...]
        out = jax.nn.sigmoid(logits) if use_sig else logits
        o_ref[0] = out.astype(o_ref.dtype)


# ---------------------------------------------------------------------------
# Wrapper-side layout plumbing (O(input bytes), no patch blowup)
# ---------------------------------------------------------------------------
def _space_to_depth_pad(x, ho, wo):
    """NCHW -> zero-padded, stride-2 space-to-depth NHWC tensor (N, Ho+3, Wo+3, 4*Cin)."""
    n, cin, h, w = x.shape
    hp, wp = 2 * ho + 6, 2 * wo + 6
    xp = jnp.pad(x, ((0, 0), (0, 0), (3, hp - h - 3), (3, wp - w - 3)))
    xp = xp.transpose(0, 2, 3, 1)                                  # NHWC
    xp = xp.reshape(n, hp // 2, 2, wp // 2, 2, cin)
    xp = xp.transpose(0, 1, 3, 2, 4, 5).reshape(n, hp // 2, wp // 2, 4 * cin)
    return xp


def _conv_taps_weights(conv0_w):
    """(Cout, Cin, 7, 7) -> (16, 4*Cin, Cout) taps of the equivalent stride-1 4x4 conv."""
    cout, cin, kh, kw = conv0_w.shape
    wp = jnp.pad(conv0_w, ((0, 0), (0, 0), (0, 8 - kh), (0, 8 - kw)))
    w2 = wp.reshape(cout, cin, 4, 2, 4, 2).transpose(2, 4, 3, 5, 1, 0)  # (di,dj,a,b,cin,cout)
    return w2.reshape(16, 4 * cin, cout)


# ---------------------------------------------------------------------------
# CheXModel forward
# ---------------------------------------------------------------------------
def init_chex_params(key, in_ch=3, stem_ch=16, n_class=14):
    """Deterministic synthetic parameters (shapes mirror conv0 / classifier head)."""
    k1, k2, k3 = jax.random.split(key, 3)
    conv0_w = jax.random.normal(k1, (stem_ch, in_ch, 7, 7), jnp.float32) * 0.05
    # replaced head: nn.Linear(in_feats, n_class)  (PyTorch stores weight as (out, in))
    fc_w = jax.random.normal(k2, (n_class, stem_ch), jnp.float32) * 0.05
    fc_b = jax.random.normal(k3, (n_class,), jnp.float32) * 0.05
    return {"conv0_w": conv0_w, "fc_w": fc_w, "fc_b": fc_b}


def chex_forward(x, params, *, use_sig=False, color=True, row_tile=None):
    """x: (N, C, H, W) float32, NCHW like PyTorch."""
    conv0_w = params["conv0_w"]
    if not color:
        # _set_head: sum conv0 weight over in-channel dim -> grayscale input
        conv0_w = conv0_w.sum(axis=1, keepdims=True)

    n, cin, h, w = x.shape
    cout = conv0_w.shape[0]
    ho = (h + 2 * 3 - 7) // 2 + 1
    wo = (w + 2 * 3 - 7) // 2 + 1

    xp2 = _space_to_depth_pad(x, ho, wo).astype(jnp.bfloat16)     # (N, Ho+3, Wo+3, 4*Cin)
    w2 = _conv_taps_weights(conv0_w).astype(jnp.bfloat16)         # (16, 4*Cin, Cout)
    fc_w = params["fc_w"].T.astype(jnp.float32)                   # (Cout, n_class)
    fc_b = params["fc_b"].reshape(1, -1).astype(jnp.float32)      # (1, n_class)
    n_class = fc_w.shape[1]

    if row_tile is None:
        row_tile = max(d for d in (4, 2, 1) if ho % d == 0)

    hp2, wp2, c2 = xp2.shape[1], xp2.shape[2], xp2.shape[3]
    kern = functools.partial(_chex_fused_kernel, wo=wo, row_tile=row_tile,
                             use_sig=use_sig, inv_p=1.0 / float(ho * wo))

    flops = 2 * n * ho * wo * (16 * c2) * cout + 2 * n * cout * n_class
    bytes_accessed = (xp2.size * 2 + w2.size * 2 + fc_w.size * 4
                      + fc_b.size * 4 + n * n_class * 4)

    out = pl.pallas_call(
        kern,
        out_shape=jax.ShapeDtypeStruct((n, 1, n_class), jnp.float32),
        grid_spec=pltpu.PrefetchScalarGridSpec(
            num_scalar_prefetch=0,
            grid=(n, ho // row_tile),
            in_specs=[
                pl.BlockSpec((1, hp2, wp2, c2), lambda i, j: (i, 0, 0, 0)),
                pl.BlockSpec((16, c2, cout), lambda i, j: (0, 0, 0)),
                pl.BlockSpec((cout, n_class), lambda i, j: (0, 0)),
                pl.BlockSpec((1, n_class), lambda i, j: (0, 0)),
            ],
            out_specs=pl.BlockSpec((1, 1, n_class), lambda i, j: (i, 0, 0)),
            scratch_shapes=[pltpu.VMEM((1, cout), jnp.float32)],
        ),
        compiler_params=pltpu.CompilerParams(
            dimension_semantics=("parallel", "arbitrary"),
            vmem_limit_bytes=32 * 1024 * 1024,
        ),
        cost_estimate=pl.CostEstimate(
            flops=int(flops),
            transcendentals=int(n * n_class) if use_sig else 0,
            bytes_accessed=int(bytes_accessed)),
    )(xp2, w2, fc_w, fc_b)

    return out.reshape(n, n_class)


# ---------------------------------------------------------------------------
def _reference_forward(x, params, *, use_sig=False, color=True):
    """Pure-JAX f32 reference for a sanity check."""
    w = params["conv0_w"]
    if not color:
        w = w.sum(axis=1, keepdims=True)
    y = jax.lax.conv_general_dilated(
        x, w, window_strides=(2, 2), padding=((3, 3), (3, 3)),
        dimension_numbers=("NCHW", "OIHW", "NCHW"),
    )
    y = jnp.maximum(y, 0.0)
    pooled = jnp.mean(y, axis=(2, 3))
    logits = pooled @ params["fc_w"].T + params["fc_b"]
    return jax.nn.sigmoid(logits) if use_sig else logits


if __name__ == "__main__":
    key = jax.random.PRNGKey(0)
    kx, kp = jax.random.split(key)

    # Small shapes: batch=2, 3 input channels (color=True), 16x16 spatial,
    # stem (in_feats) = 16, n_class = 14 (CheXModel default head width).
    x = jax.random.normal(kx, (2, 3, 16, 16), jnp.float32)
    params = init_chex_params(kp, in_ch=3, stem_ch=16, n_class=14)

    out = jax.block_until_ready(chex_forward(x, params, use_sig=False, color=True))
    ref = _reference_forward(x, params, use_sig=False, color=True)
    assert out.shape == (2, 14), out.shape
    # bf16 conv inputs -> loose tolerance vs the f32 reference
    assert jnp.allclose(out, ref, atol=2e-2, rtol=2e-2), "mismatch vs reference (linear head)"

    out_sig = jax.block_until_ready(chex_forward(x, params, use_sig=True, color=True))
    ref_sig = _reference_forward(x, params, use_sig=True, color=True)
    assert jnp.allclose(out_sig, ref_sig, atol=2e-2, rtol=2e-2), "mismatch vs reference (sigmoid head)"

    print("KERNEL_OK")
</pallas_src>

<mosaic_0001>
module attributes {stable_mosaic.version = 11 : i64} {
  func.func @_chex_fused_kernel(%arg0: i32, %arg1: i32, %arg2: memref<1x11x11x12xbf16, #tpu.memory_space<vmem>>, %arg3: memref<16x12x16xbf16, #tpu.memory_space<vmem>>, %arg4: memref<16x14xf32, #tpu.memory_space<vmem>>, %arg5: memref<1x14xf32, #tpu.memory_space<vmem>>, %arg6: memref<1x1x14xf32, #tpu.memory_space<vmem>>, %arg7: memref<1x16xf32, #tpu.memory_space<vmem>>) attributes {dimension_semantics = [#tpu.dimension_semantics<parallel>, #tpu.dimension_semantics<arbitrary>], iteration_bounds = array<i64: 2, 2>, scalar_prefetch = 0 : i64, scratch_operands = 1 : i64, tpu.core_type = #tpu.core_type<tc>, window_params = [{transform_indices = @transform_0, window_bounds = array<i64: 1, 11, 11, 12>}, {pipeline_mode = #tpu.pipeline_mode<synchronous>, transform_indices = @transform_1, window_bounds = array<i64: 16, 12, 16>}, {pipeline_mode = #tpu.pipeline_mode<synchronous>, transform_indices = @transform_2, window_bounds = array<i64: 16, 14>}, {pipeline_mode = #tpu.pipeline_mode<synchronous>, transform_indices = @transform_3, window_bounds = array<i64: 1, 14>}, {transform_indices = @transform_4, window_bounds = array<i64: 1, 1, 14>}]} {
    %c0_i32 = arith.constant 0 : i32
    %0 = arith.cmpi eq, %arg1, %c0_i32 : i32
    %1 = arith.extui %0 : i1 to i32
    %c0_i32_0 = arith.constant 0 : i32
    %2 = arith.cmpi ne, %1, %c0_i32_0 : i32
    scf.if %2 {
      %cst_576 = arith.constant 0.000000e+00 : f32
      %611 = vector.broadcast %cst_576 : f32 to vector<1x16xf32>
      %c0_577 = arith.constant 0 : index
      %c0_578 = arith.constant 0 : index
      %612 = vector.load %arg7[%c0_577, %c0_578] : memref<1x16xf32, #tpu.memory_space<vmem>>, vector<1x16xf32>
      tpu.vector_store %arg7[%c0_577, %c0_578], %611 {strides = array<i32>} : memref<1x16xf32, #tpu.memory_space<vmem>>, vector<1x16xf32>,
    } else {
    }
    %c4_i32 = arith.constant 4 : i32
    %3 = arith.muli %arg1, %c4_i32 : i32
    %cst = arith.constant 0.000000e+00 : f32
    %4 = vector.broadcast %cst : f32 to vector<1x16xf32>
    %cst_1 = arith.constant 0.000000e+00 : f32
    %5 = vector.broadcast %cst_1 : f32 to vector<8x16xf32>
    %c0_i32_2 = arith.constant 0 : i32
    %6 = arith.addi %3, %c0_i32_2 : i32
    %c0_i32_3 = arith.constant 0 : i32
    %7 = arith.addi %6, %c0_i32_3 : i32
    %c0 = arith.constant 0 : index
    %8 = arith.index_cast %7 : i32 to index
    %c0_4 = arith.constant 0 : index
    %c0_5 = arith.constant 0 : index
    %9 = vector.load %arg2[%c0, %8, %c0_4, %c0_5] : memref<1x11x11x12xbf16, #tpu.memory_space<vmem>>, vector<1x1x8x12xbf16>
    %10 = vector.shape_cast %9 : vector<1x1x8x12xbf16> to vector<8x12xbf16>
    %c0_6 = arith.constant 0 : index
    %c0_7 = arith.constant 0 : index
    %c0_8 = arith.constant 0 : index
    %11 = vector.load %arg3[%c0_6, %c0_7, %c0_8] : memref<16x12x16xbf16, #tpu.memory_space<vmem>>, vector<1x12x16xbf16>
    %12 = vector.shape_cast %11 : vector<1x12x16xbf16> to vector<12x16xbf16>
    %cst_9 = arith.constant dense<0.000000e+00> : vector<8x16xf32>
    %13 = tpu.matmul %10, %12, %cst_9 {dimension_numbers = #tpu.dot_dimension_numbers<[1], [0], [0], [1], [0, 0, 1, 1], [], []>} : vector<8x12xbf16>, vector<12x16xbf16>, vector<8x16xf32> -> vector<8x16xf32>
    %14 = arith.addf %5, %13 : vector<8x16xf32>
    %c0_i32_10 = arith.constant 0 : i32
    %15 = arith.addi %3, %c0_i32_10 : i32
    %c0_i32_11 = arith.constant 0 : i32
    %16 = arith.addi %15, %c0_i32_11 : i32
    %c0_12 = arith.constant 0 : index
    %17 = arith.index_cast %16 : i32 to index
    %c1 = arith.constant 1 : index
    %c0_13 = arith.constant 0 : index
    %18 = vector.load %arg2[%c0_12, %17, %c1, %c0_13] : memref<1x11x11x12xbf16, #tpu.memory_space<vmem>>, vector<1x1x8x12xbf16>
    %19 = vector.shape_cast %18 : vector<1x1x8x12xbf16> to vector<8x12xbf16>
    %c1_14 = arith.constant 1 : index
    %c0_15 = arith.constant 0 : index
    %c0_16 = arith.constant 0 : index
    %20 = vector.load %arg3[%c1_14, %c0_15, %c0_16] : memref<16x12x16xbf16, #tpu.memory_space<vmem>>, vector<1x12x16xbf16>
    %21 = vector.shape_cast %20 : vector<1x12x16xbf16> to vector<12x16xbf16>
    %cst_17 = arith.constant dense<0.000000e+00> : vector<8x16xf32>
    %22 = tpu.matmul %19, %21, %cst_17 {dimension_numbers = #tpu.dot_dimension_numbers<[1], [0], [0], [1], [0, 0, 1, 1], [], []>} : vector<8x12xbf16>, vector<12x16xbf16>, vector<8x16xf32> -> vector<8x16xf32>
    %23 = arith.addf %14, %22 : vector<8x16xf32>
    %c0_i32_18 = arith.constant 0 : i32
    %24 = arith.addi %3, %c0_i32_18 : i32
    %c0_i32_19 = arith.constant 0 : i32
    %25 = arith.addi %24, %c0_i32_19 : i32
    %c0_20 = arith.constant 0 : index
    %26 = arith.index_cast %25 : i32 to index
    %c2 = arith.constant 2 : index
    %c0_21 = arith.constant 0 : index
    %27 = vector.load %arg2[%c0_20, %26, %c2, %c0_21] : memref<1x11x11x12xbf16, #tpu.memory_space<vmem>>, vector<1x1x8x12xbf16>
    %28 = vector.shape_cast %27 : vector<1x1x8x12xbf16> to vector<8x12xbf16>
    %c2_22 = arith.constant 2 : index
    %c0_23 = arith.constant 0 : index
    %c0_24 = arith.constant 0 : index
    %29 = vector.load %arg3[%c2_22, %c0_23, %c0_24] : memref<16x12x16xbf16, #tpu.memory_space<vmem>>, vector<1x12x16xbf16>
    %30 = vector.shape_cast %29 : vector<1x12x16xbf16> to vector<12x16xbf16>
    %cst_25 = arith.constant dense<0.000000e+00> : vector<8x16xf32>
    %31 = tpu.matmul %28, %30, %cst_25 {dimension_numbers = #tpu.dot_dimension_numbers<[1], [0], [0], [1], [0, 0, 1, 1], [], []>} : vector<8x12xbf16>, vector<12x16xbf16>, vector<8x16xf32> -> vector<8x16xf32>
    %32 = arith.addf %23, %31 : vector<8x16xf32>
    %c0_i32_26 = arith.constant 0 : i32
    %33 = arith.addi %3, %c0_i32_26 : i32
    %c0_i32_27 = arith.constant 0 : i32
    %34 = arith.addi %33, %c0_i32_27 : i32
    %c0_28 = arith.constant 0 : index
    %35 = arith.index_cast %34 : i32 to index
    %c3 = arith.constant 3 : index
    %c0_29 = arith.constant 0 : index
    %36 = vector.load %arg2[%c0_28, %35, %c3, %c0_29] : memref<1x11x11x12xbf16, #tpu.memory_space<vmem>>, vector<1x1x8x12xbf16>
    %37 = vector.shape_cast %36 : vector<1x1x8x12xbf16> to vector<8x12xbf16>
    %c3_30 = arith.constant 3 : index
    %c0_31 = arith.constant 0 : index
    %c0_32 = arith.constant 0 : index
    %38 = vector.load %arg3[%c3_30, %c0_31, %c0_32] : memref<16x12x16xbf16, #tpu.memory_space<vmem>>, vector<1x12x16xbf16>
    %39 = vector.shape_cast %38 : vector<1x12x16xbf16> to vector<12x16xbf16>
    %cst_33 = arith.constant dense<0.000000e+00> : vector<8x16xf32>
    %40 = tpu.matmul %37, %39, %cst_33 {dimension_numbers = #tpu.dot_dimension_numbers<[1], [0], [0], [1], [0, 0, 1, 1], [], []>} : vector<8x12xbf16>, vector<12x16xbf16>, vector<8x16xf32> -> vector<8x16xf32>
    %41 = arith.addf %32, %40 : vector<8x16xf32>
    %c0_i32_34 = arith.constant 0 : i32
    %42 = arith.addi %3, %c0_i32_34 : i32
    %c1_i32 = arith.constant 1 : i32
    %43 = arith.addi %42, %c1_i32 : i32
    %c0_35 = arith.constant 0 : index
    %44 = arith.index_cast %43 : i32 to index
    %c0_36 = arith.constant 0 : index
    %c0_37 = arith.constant 0 : index
    %45 = vector.load %arg2[%c0_35, %44, %c0_36, %c0_37] : memref<1x11x11x12xbf16, #tpu.memory_space<vmem>>, vector<1x1x8x12xbf16>
    %46 = vector.shape_cast %45 : vector<1x1x8x12xbf16> to vector<8x12xbf16>
    %c4 = arith.constant 4 : index
    %c0_38 = arith.constant 0 : index
    %c0_39 = arith.constant 0 : index
    %47 = vector.load %arg3[%c4, %c0_38, %c0_39] : memref<16x12x16xbf16, #tpu.memory_space<vmem>>, vector<1x12x16xbf16>
    %48 = vector.shape_cast %47 : vector<1x12x16xbf16> to vector<12x16xbf16>
    %cst_40 = arith.constant dense<0.000000e+00> : vector<8x16xf32>
    %49 = tpu.matmul %46, %48, %cst_40 {dimension_numbers = #tpu.dot_dimension_numbers<[1], [0], [0], [1], [0, 0, 1, 1], [], []>} : vector<8x12xbf16>, vector<12x16xbf16>, vector<8x16xf32> -> vector<8x16xf32>
    %50 = arith.addf %41, %49 : vector<8x16xf32>
    %c0_i32_41 = arith.constant 0 : i32
    %51 = arith.addi %3, %c0_i32_41 : i32
    %c1_i32_42 = arith.constant 1 : i32
    %52 = arith.addi %51, %c1_i32_42 : i32
    %c0_43 = arith.constant 0 : index
    %53 = arith.index_cast %52 : i32 to index
    %c1_44 = arith.constant 1 : index
    %c0_45 = arith.constant 0 : index
    %54 = vector.load %arg2[%c0_43, %53, %c1_44, %c0_45] : memref<1x11x11x12xbf16, #tpu.memory_space<vmem>>, vector<1x1x8x12xbf16>
    %55 = vector.shape_cast %54 : vector<1x1x8x12xbf16> to vector<8x12xbf16>
    %c5 = arith.constant 5 : index
    %c0_46 = arith.constant 0 : index
    %c0_47 = arith.constant 0 : index
    %56 = vector.load %arg3[%c5, %c0_46, %c0_47] : memref<16x12x16xbf16, #tpu.memory_space<vmem>>, vector<1x12x16xbf16>
    %57 = vector.shape_cast %56 : vector<1x12x16xbf16> to vector<12x16xbf16>
    %cst_48 = arith.constant dense<0.000000e+00> : vector<8x16xf32>
    %58 = tpu.matmul %55, %57, %cst_48 {dimension_numbers = #tpu.dot_dimension_numbers<[1], [0], [0], [1], [0, 0, 1, 1], [], []>} : vector<8x12xbf16>, vector<12x16xbf16>, vector<8x16xf32> -> vector<8x16xf32>
    %59 = arith.addf %50, %58 : vector<8x16xf32>
    %c0_i32_49 = arith.constant 0 : i32
    %60 = arith.addi %3, %c0_i32_49 : i32
    %c1_i32_50 = arith.constant 1 : i32
    %61 = arith.addi %60, %c1_i32_50 : i32
    %c0_51 = arith.constant 0 : index
    %62 = arith.index_cast %61 : i32 to index
    %c2_52 = arith.constant 2 : index
    %c0_53 = arith.constant 0 : index
    %63 = vector.load %arg2[%c0_51, %62, %c2_52, %c0_53] : memref<1x11x11x12xbf16, #tpu.memory_space<vmem>>, vector<1x1x8x12xbf16>
    %64 = vector.shape_cast %63 : vector<1x1x8x12xbf16> to vector<8x12xbf16>
    %c6 = arith.constant 6 : index
    %c0_54 = arith.constant 0 : index
    %c0_55 = arith.constant 0 : index
    %65 = vector.load %arg3[%c6, %c0_54, %c0_55] : memref<16x12x16xbf16, #tpu.memory_space<vmem>>, vector<1x12x16xbf16>
    %66 = vector.shape_cast %65 : vector<1x12x16xbf16> to vector<12x16xbf16>
    %cst_56 = arith.constant dense<0.000000e+00> : vector<8x16xf32>
    %67 = tpu.matmul %64, %66, %cst_56 {dimension_numbers = #tpu.dot_dimension_numbers<[1], [0], [0], [1], [0, 0, 1, 1], [], []>} : vector<8x12xbf16>, vector<12x16xbf16>, vector<8x16xf32> -> vector<8x16xf32>
    %68 = arith.addf %59, %67 : vector<8x16xf32>
    %c0_i32_57 = arith.constant 0 : i32
    %69 = arith.addi %3, %c0_i32_57 : i32
    %c1_i32_58 = arith.constant 1 : i32
    %70 = arith.addi %69, %c1_i32_58 : i32
    %c0_59 = arith.constant 0 : index
    %71 = arith.index_cast %70 : i32 to index
    %c3_60 = arith.constant 3 : index
    %c0_61 = arith.constant 0 : index
    %72 = vector.load %arg2[%c0_59, %71, %c3_60, %c0_61] : memref<1x11x11x12xbf16, #tpu.memory_space<vmem>>, vector<1x1x8x12xbf16>
    %73 = vector.shape_cast %72 : vector<1x1x8x12xbf16> to vector<8x12xbf16>
    %c7 = arith.constant 7 : index
    %c0_62 = arith.constant 0 : index
    %c0_63 = arith.constant 0 : index
    %74 = vector.load %arg3[%c7, %c0_62, %c0_63] : memref<16x12x16xbf16, #tpu.memory_space<vmem>>, vector<1x12x16xbf16>
    %75 = vector.shape_cast %74 : vector<1x12x16xbf16> to vector<12x16xbf16>
    %cst_64 = arith.constant dense<0.000000e+00> : vector<8x16xf32>
    %76 = tpu.matmul %73, %75, %cst_64 {dimension_numbers = #tpu.dot_dimension_numbers<[1], [0], [0], [1], [0, 0, 1, 1], [], []>} : vector<8x12xbf16>, vector<12x16xbf16>, vector<8x16xf32> -> vector<8x16xf32>
    %77 = arith.addf %68, %76 : vector<8x16xf32>
    %c0_i32_65 = arith.constant 0 : i32
    %78 = arith.addi %3, %c0_i32_65 : i32
    %c2_i32 = arith.constant 2 : i32
    %79 = arith.addi %78, %c2_i32 : i32
    %c0_66 = arith.constant 0 : index
    %80 = arith.index_cast %79 : i32 to index
    %c0_67 = arith.constant 0 : index
    %c0_68 = arith.constant 0 : index
    %81 = vector.load %arg2[%c0_66, %80, %c0_67, %c0_68] : memref<1x11x11x12xbf16, #tpu.memory_space<vmem>>, vector<1x1x8x12xbf16>
    %82 = vector.shape_cast %81 : vector<1x1x8x12xbf16> to vector<8x12xbf16>
    %c8 = arith.constant 8 : index
    %c0_69 = arith.constant 0 : index
    %c0_70 = arith.constant 0 : index
    %83 = vector.load %arg3[%c8, %c0_69, %c0_70] : memref<16x12x16xbf16, #tpu.memory_space<vmem>>, vector<1x12x16xbf16>
    %84 = vector.shape_cast %83 : vector<1x12x16xbf16> to vector<12x16xbf16>
    %cst_71 = arith.constant dense<0.000000e+00> : vector<8x16xf32>
    %85 = tpu.matmul %82, %84, %cst_71 {dimension_numbers = #tpu.dot_dimension_numbers<[1], [0], [0], [1], [0, 0, 1, 1], [], []>} : vector<8x12xbf16>, vector<12x16xbf16>, vector<8x16xf32> -> vector<8x16xf32>
    %86 = arith.addf %77, %85 : vector<8x16xf32>
    %c0_i32_72 = arith.constant 0 : i32
    %87 = arith.addi %3, %c0_i32_72 : i32
    %c2_i32_73 = arith.constant 2 : i32
    %88 = arith.addi %87, %c2_i32_73 : i32
    %c0_74 = arith.constant 0 : index
    %89 = arith.index_cast %88 : i32 to index
    %c1_75 = arith.constant 1 : index
    %c0_76 = arith.constant 0 : index
    %90 = vector.load %arg2[%c0_74, %89, %c1_75, %c0_76] : memref<1x11x11x12xbf16, #tpu.memory_space<vmem>>, vector<1x1x8x12xbf16>
    %91 = vector.shape_cast %90 : vector<1x1x8x12xbf16> to vector<8x12xbf16>
    %c9 = arith.constant 9 : index
    %c0_77 = arith.constant 0 : index
    %c0_78 = arith.constant 0 : index
    %92 = vector.load %arg3[%c9, %c0_77, %c0_78] : memref<16x12x16xbf16, #tpu.memory_space<vmem>>, vector<1x12x16xbf16>
    %93 = vector.shape_cast %92 : vector<1x12x16xbf16> to vector<12x16xbf16>
    %cst_79 = arith.constant dense<0.000000e+00> : vector<8x16xf32>
    %94 = tpu.matmul %91, %93, %cst_79 {dimension_numbers = #tpu.dot_dimension_numbers<[1], [0], [0], [1], [0, 0, 1, 1], [], []>} : vector<8x12xbf16>, vector<12x16xbf16>, vector<8x16xf32> -> vector<8x16xf32>
    %95 = arith.addf %86, %94 : vector<8x16xf32>
    %c0_i32_80 = arith.constant 0 : i32
    %96 = arith.addi %3, %c0_i32_80 : i32
    %c2_i32_81 = arith.constant 2 : i32
    %97 = arith.addi %96, %c2_i32_81 : i32
    %c0_82 = arith.constant 0 : index
    %98 = arith.index_cast %97 : i32 to index
    %c2_83 = arith.constant 2 : index
    %c0_84 = arith.constant 0 : index
    %99 = vector.load %arg2[%c0_82, %98, %c2_83, %c0_84] : memref<1x11x11x12xbf16, #tpu.memory_space<vmem>>, vector<1x1x8x12xbf16>
    %100 = vector.shape_cast %99 : vector<1x1x8x12xbf16> to vector<8x12xbf16>
    %c10 = arith.constant 10 : index
    %c0_85 = arith.constant 0 : index
    %c0_86 = arith.constant 0 : index
    %101 = vector.load %arg3[%c10, %c0_85, %c0_86] : memref<16x12x16xbf16, #tpu.memory_space<vmem>>, vector<1x12x16xbf16>
    %102 = vector.shape_cast %101 : vector<1x12x16xbf16> to vector<12x16xbf16>
    %cst_87 = arith.constant dense<0.000000e+00> : vector<8x16xf32>
    %103 = tpu.matmul %100, %102, %cst_87 {dimension_numbers = #tpu.dot_dimension_numbers<[1], [0], [0], [1], [0, 0, 1, 1], [], []>} : vector<8x12xbf16>, vector<12x16xbf16>, vector<8x16xf32> -> vector<8x16xf32>
    %104 = arith.addf %95, %103 : vector<8x16xf32>
    %c0_i32_88 = arith.constant 0 : i32
    %105 = arith.addi %3, %c0_i32_88 : i32
    %c2_i32_89 = arith.constant 2 : i32
    %106 = arith.addi %105, %c2_i32_89 : i32
    %c0_90 = arith.constant 0 : index
    %107 = arith.index_cast %106 : i32 to index
    %c3_91 = arith.constant 3 : index
    %c0_92 = arith.constant 0 : index
    %108 = vector.load %arg2[%c0_90, %107, %c3_91, %c0_92] : memref<1x11x11x12xbf16, #tpu.memory_space<vmem>>, vector<1x1x8x12xbf16>
    %109 = vector.shape_cast %108 : vector<1x1x8x12xbf16> to vector<8x12xbf16>
    %c11 = arith.constant 11 : index
    %c0_93 = arith.constant 0 : index
    %c0_94 = arith.constant 0 : index
    %110 = vector.load %arg3[%c11, %c0_93, %c0_94] : memref<16x12x16xbf16, #tpu.memory_space<vmem>>, vector<1x12x16xbf16>
    %111 = vector.shape_cast %110 : vector<1x12x16xbf16> to vector<12x16xbf16>
    %cst_95 = arith.constant dense<0.000000e+00> : vector<8x16xf32>
    %112 = tpu.matmul %109, %111, %cst_95 {dimension_numbers = #tpu.dot_dimension_numbers<[1], [0], [0], [1], [0, 0, 1, 1], [], []>} : vector<8x12xbf16>, vector<12x16xbf16>, vector<8x16xf32> -> vector<8x16xf32>
    %113 = arith.addf %104, %112 : vector<8x16xf32>
    %c0_i32_96 = arith.constant 0 : i32
    %114 = arith.addi %3, %c0_i32_96 : i32
    %c3_i32 = arith.constant 3 : i32
    %115 = arith.addi %114, %c3_i32 : i32
    %c0_97 = arith.constant 0 : index
    %116 = arith.index_cast %115 : i32 to index
    %c0_98 = arith.constant 0 : index
    %c0_99 = arith.constant 0 : index
    %117 = vector.load %arg2[%c0_97, %116, %c0_98, %c0_99] : memref<1x11x11x12xbf16, #tpu.memory_space<vmem>>, vector<1x1x8x12xbf16>
    %118 = vector.shape_cast %117 : vector<1x1x8x12xbf16> to vector<8x12xbf16>
    %c12 = arith.constant 12 : index
    %c0_100 = arith.constant 0 : index
    %c0_101 = arith.constant 0 : index
    %119 = vector.load %arg3[%c12, %c0_100, %c0_101] : memref<16x12x16xbf16, #tpu.memory_space<vmem>>, vector<1x12x16xbf16>
    %120 = vector.shape_cast %119 : vector<1x12x16xbf16> to vector<12x16xbf16>
    %cst_102 = arith.constant dense<0.000000e+00> : vector<8x16xf32>
    %121 = tpu.matmul %118, %120, %cst_102 {dimension_numbers = #tpu.dot_dimension_numbers<[1], [0], [0], [1], [0, 0, 1, 1], [], []>} : vector<8x12xbf16>, vector<12x16xbf16>, vector<8x16xf32> -> vector<8x16xf32>
    %122 = arith.addf %113, %121 : vector<8x16xf32>
    %c0_i32_103 = arith.constant 0 : i32
    %123 = arith.addi %3, %c0_i32_103 : i32
    %c3_i32_104 = arith.constant 3 : i32
    %124 = arith.addi %123, %c3_i32_104 : i32
    %c0_105 = arith.constant 0 : index
    %125 = arith.index_cast %124 : i32 to index
    %c1_106 = arith.constant 1 : index
    %c0_107 = arith.constant 0 : index
    %126 = vector.load %arg2[%c0_105, %125, %c1_106, %c0_107] : memref<1x11x11x12xbf16, #tpu.memory_space<vmem>>, vector<1x1x8x12xbf16>
    %127 = vector.shape_cast %126 : vector<1x1x8x12xbf16> to vector<8x12xbf16>
    %c13 = arith.constant 13 : index
    %c0_108 = arith.constant 0 : index
    %c0_109 = arith.constant 0 : index
    %128 = vector.load %arg3[%c13, %c0_108, %c0_109] : memref<16x12x16xbf16, #tpu.memory_space<vmem>>, vector<1x12x16xbf16>
    %129 = vector.shape_cast %128 : vector<1x12x16xbf16> to vector<12x16xbf16>
    %cst_110 = arith.constant dense<0.000000e+00> : vector<8x16xf32>
    %130 = tpu.matmul %127, %129, %cst_110 {dimension_numbers = #tpu.dot_dimension_numbers<[1], [0], [0], [1], [0, 0, 1, 1], [], []>} : vector<8x12xbf16>, vector<12x16xbf16>, vector<8x16xf32> -> vector<8x16xf32>
    %131 = arith.addf %122, %130 : vector<8x16xf32>
    %c0_i32_111 = arith.constant 0 : i32
    %132 = arith.addi %3, %c0_i32_111 : i32
    %c3_i32_112 = arith.constant 3 : i32
    %133 = arith.addi %132, %c3_i32_112 : i32
    %c0_113 = arith.constant 0 : index
    %134 = arith.index_cast %133 : i32 to index
    %c2_114 = arith.constant 2 : index
    %c0_115 = arith.constant 0 : index
    %135 = vector.load %arg2[%c0_113, %134, %c2_114, %c0_115] : memref<1x11x11x12xbf16, #tpu.memory_space<vmem>>, vector<1x1x8x12xbf16>
    %136 = vector.shape_cast %135 : vector<1x1x8x12xbf16> to vector<8x12xbf16>
    %c14 = arith.constant 14 : index
    %c0_116 = arith.constant 0 : index
    %c0_117 = arith.constant 0 : index
    %137 = vector.load %arg3[%c14, %c0_116, %c0_117] : memref<16x12x16xbf16, #tpu.memory_space<vmem>>, vector<1x12x16xbf16>
    %138 = vector.shape_cast %137 : vector<1x12x16xbf16> to vector<12x16xbf16>
    %cst_118 = arith.constant dense<0.000000e+00> : vector<8x16xf32>
    %139 = tpu.matmul %136, %138, %cst_118 {dimension_numbers = #tpu.dot_dimension_numbers<[1], [0], [0], [1], [0, 0, 1, 1], [], []>} : vector<8x12xbf16>, vector<12x16xbf16>, vector<8x16xf32> -> vector<8x16xf32>
    %140 = arith.addf %131, %139 : vector<8x16xf32>
    %c0_i32_119 = arith.constant 0 : i32
    %141 = arith.addi %3, %c0_i32_119 : i32
    %c3_i32_120 = arith.constant 3 : i32
    %142 = arith.addi %141, %c3_i32_120 : i32
    %c0_121 = arith.constant 0 : index
    %143 = arith.index_cast %142 : i32 to index
    %c3_122 = arith.constant 3 : index
    %c0_123 = arith.constant 0 : index
    %144 = vector.load %arg2[%c0_121, %143, %c3_122, %c0_123] : memref<1x11x11x12xbf16, #tpu.memory_space<vmem>>, vector<1x1x8x12xbf16>
    %145 = vector.shape_cast %144 : vector<1x1x8x12xbf16> to vector<8x12xbf16>
    %c15 = arith.constant 15 : index
    %c0_124 = arith.constant 0 : index
    %c0_125 = arith.constant 0 : index
    %146 = vector.load %arg3[%c15, %c0_124, %c0_125] : memref<16x12x16xbf16, #tpu.memory_space<vmem>>, vector<1x12x16xbf16>
    %147 = vector.shape_cast %146 : vector<1x12x16xbf16> to vector<12x16xbf16>
    %cst_126 = arith.constant dense<0.000000e+00> : vector<8x16xf32>
    %148 = tpu.matmul %145, %147, %cst_126 {dimension_numbers = #tpu.dot_dimension_numbers<[1], [0], [0], [1], [0, 0, 1, 1], [], []>} : vector<8x12xbf16>, vector<12x16xbf16>, vector<8x16xf32> -> vector<8x16xf32>
    %149 = arith.addf %140, %148 : vector<8x16xf32>
    %cst_127 = arith.constant 0.000000e+00 : f32
    %150 = vector.broadcast %cst_127 : f32 to vector<8x16xf32>
    %151 = arith.maximumf %149, %150 : vector<8x16xf32>
    %cst_128 = arith.constant dense<0.000000e+00> : vector<16xf32>
    %152 = vector.multi_reduction <add>, %151, %cst_128 [0] : vector<8x16xf32> to vector<16xf32>
    %153 = vector.shape_cast %152 : vector<16xf32> to vector<1x16xf32>
    %154 = arith.addf %4, %153 : vector<1x16xf32>
    %cst_129 = arith.constant 0.000000e+00 : f32
    %155 = vector.broadcast %cst_129 : f32 to vector<8x16xf32>
    %c1_i32_130 = arith.constant 1 : i32
    %156 = arith.addi %3, %c1_i32_130 : i32
    %c0_i32_131 = arith.constant 0 : i32
    %157 = arith.addi %156, %c0_i32_131 : i32
    %c0_132 = arith.constant 0 : index
    %158 = arith.index_cast %157 : i32 to index
    %c0_133 = arith.constant 0 : index
    %c0_134 = arith.constant 0 : index
    %159 = vector.load %arg2[%c0_132, %158, %c0_133, %c0_134] : memref<1x11x11x12xbf16, #tpu.memory_space<vmem>>, vector<1x1x8x12xbf16>
    %160 = vector.shape_cast %159 : vector<1x1x8x12xbf16> to vector<8x12xbf16>
    %c0_135 = arith.constant 0 : index
    %c0_136 = arith.constant 0 : index
    %c0_137 = arith.constant 0 : index
    %161 = vector.load %arg3[%c0_135, %c0_136, %c0_137] : memref<16x12x16xbf16, #tpu.memory_space<vmem>>, vector<1x12x16xbf16>
    %162 = vector.shape_cast %161 : vector<1x12x16xbf16> to vector<12x16xbf16>
    %cst_138 = arith.constant dense<0.000000e+00> : vector<8x16xf32>
    %163 = tpu.matmul %160, %162, %cst_138 {dimension_numbers = #tpu.dot_dimension_numbers<[1], [0], [0], [1], [0, 0, 1, 1], [], []>} : vector<8x12xbf16>, vector<12x16xbf16>, vector<8x16xf32> -> vector<8x16xf32>
    %164 = arith.addf %155, %163 : vector<8x16xf32>
    %c1_i32_139 = arith.constant 1 : i32
    %165 = arith.addi %3, %c1_i32_139 : i32
    %c0_i32_140 = arith.constant 0 : i32
    %166 = arith.addi %165, %c0_i32_140 : i32
    %c0_141 = arith.constant 0 : index
    %167 = arith.index_cast %166 : i32 to index
    %c1_142 = arith.constant 1 : index
    %c0_143 = arith.constant 0 : index
    %168 = vector.load %arg2[%c0_141, %167, %c1_142, %c0_143] : memref<1x11x11x12xbf16, #tpu.memory_space<vmem>>, vector<1x1x8x12xbf16>
    %169 = vector.shape_cast %168 : vector<1x1x8x12xbf16> to vector<8x12xbf16>
    %c1_144 = arith.constant 1 : index
    %c0_145 = arith.constant 0 : index
    %c0_146 = arith.constant 0 : index
    %170 = vector.load %arg3[%c1_144, %c0_145, %c0_146] : memref<16x12x16xbf16, #tpu.memory_space<vmem>>, vector<1x12x16xbf16>
    %171 = vector.shape_cast %170 : vector<1x12x16xbf16> to vector<12x16xbf16>
    %cst_147 = arith.constant dense<0.000000e+00> : vector<8x16xf32>
    %172 = tpu.matmul %169, %171, %cst_147 {dimension_numbers = #tpu.dot_dimension_numbers<[1], [0], [0], [1], [0, 0, 1, 1], [], []>} : vector<8x12xbf16>, vector<12x16xbf16>, vector<8x16xf32> -> vector<8x16xf32>
    %173 = arith.addf %164, %172 : vector<8x16xf32>
    %c1_i32_148 = arith.constant 1 : i32
    %174 = arith.addi %3, %c1_i32_148 : i32
    %c0_i32_149 = arith.constant 0 : i32
    %175 = arith.addi %174, %c0_i32_149 : i32
    %c0_150 = arith.constant 0 : index
    %176 = arith.index_cast %175 : i32 to index
    %c2_151 = arith.constant 2 : index
    %c0_152 = arith.constant 0 : index
    %177 = vector.load %arg2[%c0_150, %176, %c2_151, %c0_152] : memref<1x11x11x12xbf16, #tpu.memory_space<vmem>>, vector<1x1x8x12xbf16>
    %178 = vector.shape_cast %177 : vector<1x1x8x12xbf16> to vector<8x12xbf16>
    %c2_153 = arith.constant 2 : index
    %c0_154 = arith.constant 0 : index
    %c0_155 = arith.constant 0 : index
    %179 = vector.load %arg3[%c2_153, %c0_154, %c0_155] : memref<16x12x16xbf16, #tpu.memory_space<vmem>>, vector<1x12x16xbf16>
    %180 = vector.shape_cast %179 : vector<1x12x16xbf16> to vector<12x16xbf16>
    %cst_156 = arith.constant dense<0.000000e+00> : vector<8x16xf32>
    %181 = tpu.matmul %178, %180, %cst_156 {dimension_numbers = #tpu.dot_dimension_numbers<[1], [0], [0], [1], [0, 0, 1, 1], [], []>} : vector<8x12xbf16>, vector<12x16xbf16>, vector<8x16xf32> -> vector<8x16xf32>
    %182 = arith.addf %173, %181 : vector<8x16xf32>
    %c1_i32_157 = arith.constant 1 : i32
    %183 = arith.addi %3, %c1_i32_157 : i32
    %c0_i32_158 = arith.constant 0 : i32
    %184 = arith.addi %183, %c0_i32_158 : i32
    %c0_159 = arith.constant 0 : index
    %185 = arith.index_cast %184 : i32 to index
    %c3_160 = arith.constant 3 : index
    %c0_161 = arith.constant 0 : index
    %186 = vector.load %arg2[%c0_159, %185, %c3_160, %c0_161] : memref<1x11x11x12xbf16, #tpu.memory_space<vmem>>, vector<1x1x8x12xbf16>
    %187 = vector.shape_cast %186 : vector<1x1x8x12xbf16> to vector<8x12xbf16>
    %c3_162 = arith.constant 3 : index
    %c0_163 = arith.constant 0 : index
    %c0_164 = arith.constant 0 : index
    %188 = vector.load %arg3[%c3_162, %c0_163, %c0_164] : memref<16x12x16xbf16, #tpu.memory_space<vmem>>, vector<1x12x16xbf16>
    %189 = vector.shape_cast %188 : vector<1x12x16xbf16> to vector<12x16xbf16>
    %cst_165 = arith.constant dense<0.000000e+00> : vector<8x16xf32>
    %190 = tpu.matmul %187, %189, %cst_165 {dimension_numbers = #tpu.dot_dimension_numbers<[1], [0], [0], [1], [0, 0, 1, 1], [], []>} : vector<8x12xbf16>, vector<12x16xbf16>, vector<8x16xf32> -> vector<8x16xf32>
    %191 = arith.addf %182, %190 : vector<8x16xf32>
    %c1_i32_166 = arith.constant 1 : i32
    %192 = arith.addi %3, %c1_i32_166 : i32
    %c1_i32_167 = arith.constant 1 : i32
    %193 = arith.addi %192, %c1_i32_167 : i32
    %c0_168 = arith.constant 0 : index
    %194 = arith.index_cast %193 : i32 to index
    %c0_169 = arith.constant 0 : index
    %c0_170 = arith.constant 0 : index
    %195 = vector.load %arg2[%c0_168, %194, %c0_169, %c0_170] : memref<1x11x11x12xbf16, #tpu.memory_space<vmem>>, vector<1x1x8x12xbf16>
    %196 = vector.shape_cast %195 : vector<1x1x8x12xbf16> to vector<8x12xbf16>
    %c4_171 = arith.constant 4 : index
    %c0_172 = arith.constant 0 : index
    %c0_173 = arith.constant 0 : index
    %197 = vector.load %arg3[%c4_171, %c0_172, %c0_173] : memref<16x12x16xbf16, #tpu.memory_space<vmem>>, vector<1x12x16xbf16>
    %198 = vector.shape_cast %197 : vector<1x12x16xbf16> to vector<12x16xbf16>
    %cst_174 = arith.constant dense<0.000000e+00> : vector<8x16xf32>
    %199 = tpu.matmul %196, %198, %cst_174 {dimension_numbers = #tpu.dot_dimension_numbers<[1], [0], [0], [1], [0, 0, 1, 1], [], []>} : vector<8x12xbf16>, vector<12x16xbf16>, vector<8x16xf32> -> vector<8x16xf32>
    %200 = arith.addf %191, %199 : vector<8x16xf32>
    %c1_i32_175 = arith.constant 1 : i32
    %201 = arith.addi %3, %c1_i32_175 : i32
    %c1_i32_176 = arith.constant 1 : i32
    %202 = arith.addi %201, %c1_i32_176 : i32
    %c0_177 = arith.constant 0 : index
    %203 = arith.index_cast %202 : i32 to index
    %c1_178 = arith.constant 1 : index
    %c0_179 = arith.constant 0 : index
    %204 = vector.load %arg2[%c0_177, %203, %c1_178, %c0_179] : memref<1x11x11x12xbf16, #tpu.memory_space<vmem>>, vector<1x1x8x12xbf16>
    %205 = vector.shape_cast %204 : vector<1x1x8x12xbf16> to vector<8x12xbf16>
    %c5_180 = arith.constant 5 : index
    %c0_181 = arith.constant 0 : index
    %c0_182 = arith.constant 0 : index
    %206 = vector.load %arg3[%c5_180, %c0_181, %c0_182] : memref<16x12x16xbf16, #tpu.memory_space<vmem>>, vector<1x12x16xbf16>
    %207 = vector.shape_cast %206 : vector<1x12x16xbf16> to vector<12x16xbf16>
    %cst_183 = arith.constant dense<0.000000e+00> : vector<8x16xf32>
    %208 = tpu.matmul %205, %207, %cst_183 {dimension_numbers = #tpu.dot_dimension_numbers<[1], [0], [0], [1], [0, 0, 1, 1], [], []>} : vector<8x12xbf16>, vector<12x16xbf16>, vector<8x16xf32> -> vector<8x16xf32>
    %209 = arith.addf %200, %208 : vector<8x16xf32>
    %c1_i32_184 = arith.constant 1 : i32
    %210 = arith.addi %3, %c1_i32_184 : i32
    %c1_i32_185 = arith.constant 1 : i32
    %211 = arith.addi %210, %c1_i32_185 : i32
    %c0_186 = arith.constant 0 : index
    %212 = arith.index_cast %211 : i32 to index
    %c2_187 = arith.constant 2 : index
    %c0_188 = arith.constant 0 : index
    %213 = vector.load %arg2[%c0_186, %212, %c2_187, %c0_188] : memref<1x11x11x12xbf16, #tpu.memory_space<vmem>>, vector<1x1x8x12xbf16>
    %214 = vector.shape_cast %213 : vector<1x1x8x12xbf16> to vector<8x12xbf16>
    %c6_189 = arith.constant 6 : index
    %c0_190 = arith.constant 0 : index
    %c0_191 = arith.constant 0 : index
    %215 = vector.load %arg3[%c6_189, %c0_190, %c0_191] : memref<16x12x16xbf16, #tpu.memory_space<vmem>>, vector<1x12x16xbf16>
    %216 = vector.shape_cast %215 : vector<1x12x16xbf16> to vector<12x16xbf16>
    %cst_192 = arith.constant dense<0.000000e+00> : vector<8x16xf32>
    %217 = tpu.matmul %214, %216, %cst_192 {dimension_numbers = #tpu.dot_dimension_numbers<[1], [0], [0], [1], [0, 0, 1, 1], [], []>} : vector<8x12xbf16>, vector<12x16xbf16>, vector<8x16xf32> -> vector<8x16xf32>
    %218 = arith.addf %209, %217 : vector<8x16xf32>
    %c1_i32_193 = arith.constant 1 : i32
    %219 = arith.addi %3, %c1_i32_193 : i32
    %c1_i32_194 = arith.constant 1 : i32
    %220 = arith.addi %219, %c1_i32_194 : i32
    %c0_195 = arith.constant 0 : index
    %221 = arith.index_cast %220 : i32 to index
    %c3_196 = arith.constant 3 : index
    %c0_197 = arith.constant 0 : index
    %222 = vector.load %arg2[%c0_195, %221, %c3_196, %c0_197] : memref<1x11x11x12xbf16, #tpu.memory_space<vmem>>, vector<1x1x8x12xbf16>
    %223 = vector.shape_cast %222 : vector<1x1x8x12xbf16> to vector<8x12xbf16>
    %c7_198 = arith.constant 7 : index
    %c0_199 = arith.constant 0 : index
    %c0_200 = arith.constant 0 : index
    %224 = vector.load %arg3[%c7_198, %c0_199, %c0_200] : memref<16x12x16xbf16, #tpu.memory_space<vmem>>, vector<1x12x16xbf16>
    %225 = vector.shape_cast %224 : vector<1x12x16xbf16> to vector<12x16xbf16>
    %cst_201 = arith.constant dense<0.000000e+00> : vector<8x16xf32>
    %226 = tpu.matmul %223, %225, %cst_201 {dimension_numbers = #tpu.dot_dimension_numbers<[1], [0], [0], [1], [0, 0, 1, 1], [], []>} : vector<8x12xbf16>, vector<12x16xbf16>, vector<8x16xf32> -> vector<8x16xf32>
    %227 = arith.addf %218, %226 : vector<8x16xf32>
    %c1_i32_202 = arith.constant 1 : i32
    %228 = arith.addi %3, %c1_i32_202 : i32
    %c2_i32_203 = arith.constant 2 : i32
    %229 = arith.addi %228, %c2_i32_203 : i32
    %c0_204 = arith.constant 0 : index
    %230 = arith.index_cast %229 : i32 to index
    %c0_205 = arith.constant 0 : index
    %c0_206 = arith.constant 0 : index
    %231 = vector.load %arg2[%c0_204, %230, %c0_205, %c0_206] : memref<1x11x11x12xbf16, #tpu.memory_space<vmem>>, vector<1x1x8x12xbf16>
    %232 = vector.shape_cast %231 : vector<1x1x8x12xbf16> to vector<8x12xbf16>
    %c8_207 = arith.constant 8 : index
    %c0_208 = arith.constant 0 : index
    %c0_209 = arith.constant 0 : index
    %233 = vector.load %arg3[%c8_207, %c0_208, %c0_209] : memref<16x12x16xbf16, #tpu.memory_space<vmem>>, vector<1x12x16xbf16>
    %234 = vector.shape_cast %233 : vector<1x12x16xbf16> to vector<12x16xbf16>
    %cst_210 = arith.constant dense<0.000000e+00> : vector<8x16xf32>
    %235 = tpu.matmul %232, %234, %cst_210 {dimension_numbers = #tpu.dot_dimension_numbers<[1], [0], [0], [1], [0, 0, 1, 1], [], []>} : vector<8x12xbf16>, vector<12x16xbf16>, vector<8x16xf32> -> vector<8x16xf32>
    %236 = arith.addf %227, %235 : vector<8x16xf32>
    %c1_i32_211 = arith.constant 1 : i32
    %237 = arith.addi %3, %c1_i32_211 : i32
    %c2_i32_212 = arith.constant 2 : i32
    %238 = arith.addi %237, %c2_i32_212 : i32
    %c0_213 = arith.constant 0 : index
    %239 = arith.index_cast %238 : i32 to index
    %c1_214 = arith.constant 1 : index
    %c0_215 = arith.constant 0 : index
    %240 = vector.load %arg2[%c0_213, %239, %c1_214, %c0_215] : memref<1x11x11x12xbf16, #tpu.memory_space<vmem>>, vector<1x1x8x12xbf16>
    %241 = vector.shape_cast %240 : vector<1x1x8x12xbf16> to vector<8x12xbf16>
    %c9_216 = arith.constant 9 : index
    %c0_217 = arith.constant 0 : index
    %c0_218 = arith.constant 0 : index
    %242 = vector.load %arg3[%c9_216, %c0_217, %c0_218] : memref<16x12x16xbf16, #tpu.memory_space<vmem>>, vector<1x12x16xbf16>
    %243 = vector.shape_cast %242 : vector<1x12x16xbf16> to vector<12x16xbf16>
    %cst_219 = arith.constant dense<0.000000e+00> : vector<8x16xf32>
    %244 = tpu.matmul %241, %243, %cst_219 {dimension_numbers = #tpu.dot_dimension_numbers<[1], [0], [0], [1], [0, 0, 1, 1], [], []>} : vector<8x12xbf16>, vector<12x16xbf16>, vector<8x16xf32> -> vector<8x16xf32>
    %245 = arith.addf %236, %244 : vector<8x16xf32>
    %c1_i32_220 = arith.constant 1 : i32
    %246 = arith.addi %3, %c1_i32_220 : i32
    %c2_i32_221 = arith.constant 2 : i32
    %247 = arith.addi %246, %c2_i32_221 : i32
    %c0_222 = arith.constant 0 : index
    %248 = arith.index_cast %247 : i32 to index
    %c2_223 = arith.constant 2 : index
    %c0_224 = arith.constant 0 : index
    %249 = vector.load %arg2[%c0_222, %248, %c2_223, %c0_224] : memref<1x11x11x12xbf16, #tpu.memory_space<vmem>>, vector<1x1x8x12xbf16>
    %250 = vector.shape_cast %249 : vector<1x1x8x12xbf16> to vector<8x12xbf16>
    %c10_225 = arith.constant 10 : index
    %c0_226 = arith.constant 0 : index
    %c0_227 = arith.constant 0 : index
    %251 = vector.load %arg3[%c10_225, %c0_226, %c0_227] : memref<16x12x16xbf16, #tpu.memory_space<vmem>>, vector<1x12x16xbf16>
    %252 = vector.shape_cast %251 : vector<1x12x16xbf16> to vector<12x16xbf16>
    %cst_228 = arith.constant dense<0.000000e+00> : vector<8x16xf32>
    %253 = tpu.matmul %250, %252, %cst_228 {dimension_numbers = #tpu.dot_dimension_numbers<[1], [0], [0], [1], [0, 0, 1, 1], [], []>} : vector<8x12xbf16>, vector<12x16xbf16>, vector<8x16xf32> -> vector<8x16xf32>
    %254 = arith.addf %245, %253 : vector<8x16xf32>
    %c1_i32_229 = arith.constant 1 : i32
    %255 = arith.addi %3, %c1_i32_229 : i32
    %c2_i32_230 = arith.constant 2 : i32
    %256 = arith.addi %255, %c2_i32_230 : i32
    %c0_231 = arith.constant 0 : index
    %257 = arith.index_cast %256 : i32 to index
    %c3_232 = arith.constant 3 : index
    %c0_233 = arith.constant 0 : index
    %258 = vector.load %arg2[%c0_231, %257, %c3_232, %c0_233] : memref<1x11x11x12xbf16, #tpu.memory_space<vmem>>, vector<1x1x8x12xbf16>
    %259 = vector.shape_cast %258 : vector<1x1x8x12xbf16> to vector<8x12xbf16>
    %c11_234 = arith.constant 11 : index
    %c0_235 = arith.constant 0 : index
    %c0_236 = arith.constant 0 : index
    %260 = vector.load %arg3[%c11_234, %c0_235, %c0_236] : memref<16x12x16xbf16, #tpu.memory_space<vmem>>, vector<1x12x16xbf16>
    %261 = vector.shape_cast %260 : vector<1x12x16xbf16> to vector<12x16xbf16>
    %cst_237 = arith.constant dense<0.000000e+00> : vector<8x16xf32>
    %262 = tpu.matmul %259, %261, %cst_237 {dimension_numbers = #tpu.dot_dimension_numbers<[1], [0], [0], [1], [0, 0, 1, 1], [], []>} : vector<8x12xbf16>, vector<12x16xbf16>, vector<8x16xf32> -> vector<8x16xf32>
    %263 = arith.addf %254, %262 : vector<8x16xf32>
    %c1_i32_238 = arith.constant 1 : i32
    %264 = arith.addi %3, %c1_i32_238 : i32
    %c3_i32_239 = arith.constant 3 : i32
    %265 = arith.addi %264, %c3_i32_239 : i32
    %c0_240 = arith.constant 0 : index
    %266 = arith.index_cast %265 : i32 to index
    %c0_241 = arith.constant 0 : index
    %c0_242 = arith.constant 0 : index
    %267 = vector.load %arg2[%c0_240, %266, %c0_241, %c0_242] : memref<1x11x11x12xbf16, #tpu.memory_space<vmem>>, vector<1x1x8x12xbf16>
    %268 = vector.shape_cast %267 : vector<1x1x8x12xbf16> to vector<8x12xbf16>
    %c12_243 = arith.constant 12 : index
    %c0_244 = arith.constant 0 : index
    %c0_245 = arith.constant 0 : index
    %269 = vector.load %arg3[%c12_243, %c0_244, %c0_245] : memref<16x12x16xbf16, #tpu.memory_space<vmem>>, vector<1x12x16xbf16>
    %270 = vector.shape_cast %269 : vector<1x12x16xbf16> to vector<12x16xbf16>
    %cst_246 = arith.constant dense<0.000000e+00> : vector<8x16xf32>
    %271 = tpu.matmul %268, %270, %cst_246 {dimension_numbers = #tpu.dot_dimension_numbers<[1], [0], [0], [1], [0, 0, 1, 1], [], []>} : vector<8x12xbf16>, vector<12x16xbf16>, vector<8x16xf32> -> vector<8x16xf32>
    %272 = arith.addf %263, %271 : vector<8x16xf32>
    %c1_i32_247 = arith.constant 1 : i32
    %273 = arith.addi %3, %c1_i32_247 : i32
    %c3_i32_248 = arith.constant 3 : i32
    %274 = arith.addi %273, %c3_i32_248 : i32
    %c0_249 = arith.constant 0 : index
    %275 = arith.index_cast %274 : i32 to index
    %c1_250 = arith.constant 1 : index
    %c0_251 = arith.constant 0 : index
    %276 = vector.load %arg2[%c0_249, %275, %c1_250, %c0_251] : memref<1x11x11x12xbf16, #tpu.memory_space<vmem>>, vector<1x1x8x12xbf16>
    %277 = vector.shape_cast %276 : vector<1x1x8x12xbf16> to vector<8x12xbf16>
    %c13_252 = arith.constant 13 : index
    %c0_253 = arith.constant 0 : index
    %c0_254 = arith.constant 0 : index
    %278 = vector.load %arg3[%c13_252, %c0_253, %c0_254] : memref<16x12x16xbf16, #tpu.memory_space<vmem>>, vector<1x12x16xbf16>
    %279 = vector.shape_cast %278 : vector<1x12x16xbf16> to vector<12x16xbf16>
    %cst_255 = arith.constant dense<0.000000e+00> : vector<8x16xf32>
    %280 = tpu.matmul %277, %279, %cst_255 {dimension_numbers = #tpu.dot_dimension_numbers<[1], [0], [0], [1], [0, 0, 1, 1], [], []>} : vector<8x12xbf16>, vector<12x16xbf16>, vector<8x16xf32> -> vector<8x16xf32>
    %281 = arith.addf %272, %280 : vector<8x16xf32>
    %c1_i32_256 = arith.constant 1 : i32
    %282 = arith.addi %3, %c1_i32_256 : i32
    %c3_i32_257 = arith.constant 3 : i32
    %283 = arith.addi %282, %c3_i32_257 : i32
    %c0_258 = arith.constant 0 : index
    %284 = arith.index_cast %283 : i32 to index
    %c2_259 = arith.constant 2 : index
    %c0_260 = arith.constant 0 : index
    %285 = vector.load %arg2[%c0_258, %284, %c2_259, %c0_260] : memref<1x11x11x12xbf16, #tpu.memory_space<vmem>>, vector<1x1x8x12xbf16>
    %286 = vector.shape_cast %285 : vector<1x1x8x12xbf16> to vector<8x12xbf16>
    %c14_261 = arith.constant 14 : index
    %c0_262 = arith.constant 0 : index
    %c0_263 = arith.constant 0 : index
    %287 = vector.load %arg3[%c14_261, %c0_262, %c0_263] : memref<16x12x16xbf16, #tpu.memory_space<vmem>>, vector<1x12x16xbf16>
    %288 = vector.shape_cast %287 : vector<1x12x16xbf16> to vector<12x16xbf16>
    %cst_264 = arith.constant dense<0.000000e+00> : vector<8x16xf32>
    %289 = tpu.matmul %286, %288, %cst_264 {dimension_numbers = #tpu.dot_dimension_numbers<[1], [0], [0], [1], [0, 0, 1, 1], [], []>} : vector<8x12xbf16>, vector<12x16xbf16>, vector<8x16xf32> -> vector<8x16xf32>
    %290 = arith.addf %281, %289 : vector<8x16xf32>
    %c1_i32_265 = arith.constant 1 : i32
    %291 = arith.addi %3, %c1_i32_265 : i32
    %c3_i32_266 = arith.constant 3 : i32
    %292 = arith.addi %291, %c3_i32_266 : i32
    %c0_267 = arith.constant 0 : index
    %293 = arith.index_cast %292 : i32 to index
    %c3_268 = arith.constant 3 : index
    %c0_269 = arith.constant 0 : index
    %294 = vector.load %arg2[%c0_267, %293, %c3_268, %c0_269] : memref<1x11x11x12xbf16, #tpu.memory_space<vmem>>, vector<1x1x8x12xbf16>
    %295 = vector.shape_cast %294 : vector<1x1x8x12xbf16> to vector<8x12xbf16>
    %c15_270 = arith.constant 15 : index
    %c0_271 = arith.constant 0 : index
    %c0_272 = arith.constant 0 : index
    %296 = vector.load %arg3[%c15_270, %c0_271, %c0_272] : memref<16x12x16xbf16, #tpu.memory_space<vmem>>, vector<1x12x16xbf16>
    %297 = vector.shape_cast %296 : vector<1x12x16xbf16> to vector<12x16xbf16>
    %cst_273 = arith.constant dense<0.000000e+00> : vector<8x16xf32>
    %298 = tpu.matmul %295, %297, %cst_273 {dimension_numbers = #tpu.dot_dimension_numbers<[1], [0], [0], [1], [0, 0, 1, 1], [], []>} : vector<8x12xbf16>, vector<12x16xbf16>, vector<8x16xf32> -> vector<8x16xf32>
    %299 = arith.addf %290, %298 : vector<8x16xf32>
    %cst_274 = arith.constant 0.000000e+00 : f32
    %300 = vector.broadcast %cst_274 : f32 to vector<8x16xf32>
    %301 = arith.maximumf %299, %300 : vector<8x16xf32>
    %cst_275 = arith.constant dense<0.000000e+00> : vector<16xf32>
    %302 = vector.multi_reduction <add>, %301, %cst_275 [0] : vector<8x16xf32> to vector<16xf32>
    %303 = vector.shape_cast %302 : vector<16xf32> to vector<1x16xf32>
    %304 = arith.addf %154, %303 : vector<1x16xf32>
    %cst_276 = arith.constant 0.000000e+00 : f32
    %305 = vector.broadcast %cst_276 : f32 to vector<8x16xf32>
    %c2_i32_277 = arith.constant 2 : i32
    %306 = arith.addi %3, %c2_i32_277 : i32
    %c0_i32_278 = arith.constant 0 : i32
    %307 = arith.addi %306, %c0_i32_278 : i32
    %c0_279 = arith.constant 0 : index
    %308 = arith.index_cast %307 : i32 to index
    %c0_280 = arith.constant 0 : index
    %c0_281 = arith.constant 0 : index
    %309 = vector.load %arg2[%c0_279, %308, %c0_280, %c0_281] : memref<1x11x11x12xbf16, #tpu.memory_space<vmem>>, vector<1x1x8x12xbf16>
    %310 = vector.shape_cast %309 : vector<1x1x8x12xbf16> to vector<8x12xbf16>
    %c0_282 = arith.constant 0 : index
    %c0_283 = arith.constant 0 : index
    %c0_284 = arith.constant 0 : index
    %311 = vector.load %arg3[%c0_282, %c0_283, %c0_284] : memref<16x12x16xbf16, #tpu.memory_space<vmem>>, vector<1x12x16xbf16>
    %312 = vector.shape_cast %311 : vector<1x12x16xbf16> to vector<12x16xbf16>
    %cst_285 = arith.constant dense<0.000000e+00> : vector<8x16xf32>
    %313 = tpu.matmul %310, %312, %cst_285 {dimension_numbers = #tpu.dot_dimension_numbers<[1], [0], [0], [1], [0, 0, 1, 1], [], []>} : vector<8x12xbf16>, vector<12x16xbf16>, vector<8x16xf32> -> vector<8x16xf32>
    %314 = arith.addf %305, %313 : vector<8x16xf32>
    %c2_i32_286 = arith.constant 2 : i32
    %315 = arith.addi %3, %c2_i32_286 : i32
    %c0_i32_287 = arith.constant 0 : i32
    %316 = arith.addi %315, %c0_i32_287 : i32
    %c0_288 = arith.constant 0 : index
    %317 = arith.index_cast %316 : i32 to index
    %c1_289 = arith.constant 1 : index
    %c0_290 = arith.constant 0 : index
    %318 = vector.load %arg2[%c0_288, %317, %c1_289, %c0_290] : memref<1x11x11x12xbf16, #tpu.memory_space<vmem>>, vector<1x1x8x12xbf16>
    %319 = vector.shape_cast %318 : vector<1x1x8x12xbf16> to vector<8x12xbf16>
    %c1_291 = arith.constant 1 : index
    %c0_292 = arith.constant 0 : index
    %c0_293 = arith.constant 0 : index
    %320 = vector.load %arg3[%c1_291, %c0_292, %c0_293] : memref<16x12x16xbf16, #tpu.memory_space<vmem>>, vector<1x12x16xbf16>
    %321 = vector.shape_cast %320 : vector<1x12x16xbf16> to vector<12x16xbf16>
    %cst_294 = arith.constant dense<0.000000e+00> : vector<8x16xf32>
    %322 = tpu.matmul %319, %321, %cst_294 {dimension_numbers = #tpu.dot_dimension_numbers<[1], [0], [0], [1], [0, 0, 1, 1], [], []>} : vector<8x12xbf16>, vector<12x16xbf16>, vector<8x16xf32> -> vector<8x16xf32>
    %323 = arith.addf %314, %322 : vector<8x16xf32>
    %c2_i32_295 = arith.constant 2 : i32
    %324 = arith.addi %3, %c2_i32_295 : i32
    %c0_i32_296 = arith.constant 0 : i32
    %325 = arith.addi %324, %c0_i32_296 : i32
    %c0_297 = arith.constant 0 : index
    %326 = arith.index_cast %325 : i32 to index
    %c2_298 = arith.constant 2 : index
    %c0_299 = arith.constant 0 : index
    %327 = vector.load %arg2[%c0_297, %326, %c2_298, %c0_299] : memref<1x11x11x12xbf16, #tpu.memory_space<vmem>>, vector<1x1x8x12xbf16>
    %328 = vector.shape_cast %327 : vector<1x1x8x12xbf16> to vector<8x12xbf16>
    %c2_300 = arith.constant 2 : index
    %c0_301 = arith.constant 0 : index
    %c0_302 = arith.constant 0 : index
    %329 = vector.load %arg3[%c2_300, %c0_301, %c0_302] : memref<16x12x16xbf16, #tpu.memory_space<vmem>>, vector<1x12x16xbf16>
    %330 = vector.shape_cast %329 : vector<1x12x16xbf16> to vector<12x16xbf16>
    %cst_303 = arith.constant dense<0.000000e+00> : vector<8x16xf32>
    %331 = tpu.matmul %328, %330, %cst_303 {dimension_numbers = #tpu.dot_dimension_numbers<[1], [0], [0], [1], [0, 0, 1, 1], [], []>} : vector<8x12xbf16>, vector<12x16xbf16>, vector<8x16xf32> -> vector<8x16xf32>
    %332 = arith.addf %323, %331 : vector<8x16xf32>
    %c2_i32_304 = arith.constant 2 : i32
    %333 = arith.addi %3, %c2_i32_304 : i32
    %c0_i32_305 = arith.constant 0 : i32
    %334 = arith.addi %333, %c0_i32_305 : i32
    %c0_306 = arith.constant 0 : index
    %335 = arith.index_cast %334 : i32 to index
    %c3_307 = arith.constant 3 : index
    %c0_308 = arith.constant 0 : index
    %336 = vector.load %arg2[%c0_306, %335, %c3_307, %c0_308] : memref<1x11x11x12xbf16, #tpu.memory_space<vmem>>, vector<1x1x8x12xbf16>
    %337 = vector.shape_cast %336 : vector<1x1x8x12xbf16> to vector<8x12xbf16>
    %c3_309 = arith.constant 3 : index
    %c0_310 = arith.constant 0 : index
    %c0_311 = arith.constant 0 : index
    %338 = vector.load %arg3[%c3_309, %c0_310, %c0_311] : memref<16x12x16xbf16, #tpu.memory_space<vmem>>, vector<1x12x16xbf16>
    %339 = vector.shape_cast %338 : vector<1x12x16xbf16> to vector<12x16xbf16>
    %cst_312 = arith.constant dense<0.000000e+00> : vector<8x16xf32>
    %340 = tpu.matmul %337, %339, %cst_312 {dimension_numbers = #tpu.dot_dimension_numbers<[1], [0], [0], [1], [0, 0, 1, 1], [], []>} : vector<8x12xbf16>, vector<12x16xbf16>, vector<8x16xf32> -> vector<8x16xf32>
    %341 = arith.addf %332, %340 : vector<8x16xf32>
    %c2_i32_313 = arith.constant 2 : i32
    %342 = arith.addi %3, %c2_i32_313 : i32
    %c1_i32_314 = arith.constant 1 : i32
    %343 = arith.addi %342, %c1_i32_314 : i32
    %c0_315 = arith.constant 0 : index
    %344 = arith.index_cast %343 : i32 to index
    %c0_316 = arith.constant 0 : index
    %c0_317 = arith.constant 0 : index
    %345 = vector.load %arg2[%c0_315, %344, %c0_316, %c0_317] : memref<1x11x11x12xbf16, #tpu.memory_space<vmem>>, vector<1x1x8x12xbf16>
    %346 = vector.shape_cast %345 : vector<1x1x8x12xbf16> to vector<8x12xbf16>
    %c4_318 = arith.constant 4 : index
    %c0_319 = arith.constant 0 : index
    %c0_320 = arith.constant 0 : index
    %347 = vector.load %arg3[%c4_318, %c0_319, %c0_320] : memref<16x12x16xbf16, #tpu.memory_space<vmem>>, vector<1x12x16xbf16>
    %348 = vector.shape_cast %347 : vector<1x12x16xbf16> to vector<12x16xbf16>
    %cst_321 = arith.constant dense<0.000000e+00> : vector<8x16xf32>
    %349 = tpu.matmul %346, %348, %cst_321 {dimension_numbers = #tpu.dot_dimension_numbers<[1], [0], [0], [1], [0, 0, 1, 1], [], []>} : vector<8x12xbf16>, vector<12x16xbf16>, vector<8x16xf32> -> vector<8x16xf32>
    %350 = arith.addf %341, %349 : vector<8x16xf32>
    %c2_i32_322 = arith.constant 2 : i32
    %351 = arith.addi %3, %c2_i32_322 : i32
    %c1_i32_323 = arith.constant 1 : i32
    %352 = arith.addi %351, %c1_i32_323 : i32
    %c0_324 = arith.constant 0 : index
    %353 = arith.index_cast %352 : i32 to index
    %c1_325 = arith.constant 1 : index
    %c0_326 = arith.constant 0 : index
    %354 = vector.load %arg2[%c0_324, %353, %c1_325, %c0_326] : memref<1x11x11x12xbf16, #tpu.memory_space<vmem>>, vector<1x1x8x12xbf16>
    %355 = vector.shape_cast %354 : vector<1x1x8x12xbf16> to vector<8x12xbf16>
    %c5_327 = arith.constant 5 : index
    %c0_328 = arith.constant 0 : index
    %c0_329 = arith.constant 0 : index
    %356 = vector.load %arg3[%c5_327, %c0_328, %c0_329] : memref<16x12x16xbf16, #tpu.memory_space<vmem>>, vector<1x12x16xbf16>
    %357 = vector.shape_cast %356 : vector<1x12x16xbf16> to vector<12x16xbf16>
    %cst_330 = arith.constant dense<0.000000e+00> : vector<8x16xf32>
    %358 = tpu.matmul %355, %357, %cst_330 {dimension_numbers = #tpu.dot_dimension_numbers<[1], [0], [0], [1], [0, 0, 1, 1], [], []>} : vector<8x12xbf16>, vector<12x16xbf16>, vector<8x16xf32> -> vector<8x16xf32>
    %359 = arith.addf %350, %358 : vector<8x16xf32>
    %c2_i32_331 = arith.constant 2 : i32
    %360 = arith.addi %3, %c2_i32_331 : i32
    %c1_i32_332 = arith.constant 1 : i32
    %361 = arith.addi %360, %c1_i32_332 : i32
    %c0_333 = arith.constant 0 : index
    %362 = arith.index_cast %361 : i32 to index
    %c2_334 = arith.constant 2 : index
    %c0_335 = arith.constant 0 : index
    %363 = vector.load %arg2[%c0_333, %362, %c2_334, %c0_335] : memref<1x11x11x12xbf16, #tpu.memory_space<vmem>>, vector<1x1x8x12xbf16>
    %364 = vector.shape_cast %363 : vector<1x1x8x12xbf16> to vector<8x12xbf16>
    %c6_336 = arith.constant 6 : index
    %c0_337 = arith.constant 0 : index
    %c0_338 = arith.constant 0 : index
    %365 = vector.load %arg3[%c6_336, %c0_337, %c0_338] : memref<16x12x16xbf16, #tpu.memory_space<vmem>>, vector<1x12x16xbf16>
    %366 = vector.shape_cast %365 : vector<1x12x16xbf16> to vector<12x16xbf16>
    %cst_339 = arith.constant dense<0.000000e+00> : vector<8x16xf32>
    %367 = tpu.matmul %364, %366, %cst_339 {dimension_numbers = #tpu.dot_dimension_numbers<[1], [0], [0], [1], [0, 0, 1, 1], [], []>} : vector<8x12xbf16>, vector<12x16xbf16>, vector<8x16xf32> -> vector<8x16xf32>
    %368 = arith.addf %359, %367 : vector<8x16xf32>
    %c2_i32_340 = arith.constant 2 : i32
    %369 = arith.addi %3, %c2_i32_340 : i32
    %c1_i32_341 = arith.constant 1 : i32
    %370 = arith.addi %369, %c1_i32_341 : i32
    %c0_342 = arith.constant 0 : index
    %371 = arith.index_cast %370 : i32 to index
    %c3_343 = arith.constant 3 : index
    %c0_344 = arith.constant 0 : index
    %372 = vector.load %arg2[%c0_342, %371, %c3_343, %c0_344] : memref<1x11x11x12xbf16, #tpu.memory_space<vmem>>, vector<1x1x8x12xbf16>
    %373 = vector.shape_cast %372 : vector<1x1x8x12xbf16> to vector<8x12xbf16>
    %c7_345 = arith.constant 7 : index
    %c0_346 = arith.constant 0 : index
    %c0_347 = arith.constant 0 : index
    %374 = vector.load %arg3[%c7_345, %c0_346, %c0_347] : memref<16x12x16xbf16, #tpu.memory_space<vmem>>, vector<1x12x16xbf16>
    %375 = vector.shape_cast %374 : vector<1x12x16xbf16> to vector<12x16xbf16>
    %cst_348 = arith.constant dense<0.000000e+00> : vector<8x16xf32>
    %376 = tpu.matmul %373, %375, %cst_348 {dimension_numbers = #tpu.dot_dimension_numbers<[1], [0], [0], [1], [0, 0, 1, 1], [], []>} : vector<8x12xbf16>, vector<12x16xbf16>, vector<8x16xf32> -> vector<8x16xf32>
    %377 = arith.addf %368, %376 : vector<8x16xf32>
    %c2_i32_349 = arith.constant 2 : i32
    %378 = arith.addi %3, %c2_i32_349 : i32
    %c2_i32_350 = arith.constant 2 : i32
    %379 = arith.addi %378, %c2_i32_350 : i32
    %c0_351 = arith.constant 0 : index
    %380 = arith.index_cast %379 : i32 to index
    %c0_352 = arith.constant 0 : index
    %c0_353 = arith.constant 0 : index
    %381 = vector.load %arg2[%c0_351, %380, %c0_352, %c0_353] : memref<1x11x11x12xbf16, #tpu.memory_space<vmem>>, vector<1x1x8x12xbf16>
    %382 = vector.shape_cast %381 : vector<1x1x8x12xbf16> to vector<8x12xbf16>
    %c8_354 = arith.constant 8 : index
    %c0_355 = arith.constant 0 : index
    %c0_356 = arith.constant 0 : index
    %383 = vector.load %arg3[%c8_354, %c0_355, %c0_356] : memref<16x12x16xbf16, #tpu.memory_space<vmem>>, vector<1x12x16xbf16>
    %384 = vector.shape_cast %383 : vector<1x12x16xbf16> to vector<12x16xbf16>
    %cst_357 = arith.constant dense<0.000000e+00> : vector<8x16xf32>
    %385 = tpu.matmul %382, %384, %cst_357 {dimension_numbers = #tpu.dot_dimension_numbers<[1], [0], [0], [1], [0, 0, 1, 1], [], []>} : vector<8x12xbf16>, vector<12x16xbf16>, vector<8x16xf32> -> vector<8x16xf32>
    %386 = arith.addf %377, %385 : vector<8x16xf32>
    %c2_i32_358 = arith.constant 2 : i32
    %387 = arith.addi %3, %c2_i32_358 : i32
    %c2_i32_359 = arith.constant 2 : i32
    %388 = arith.addi %387, %c2_i32_359 : i32
    %c0_360 = arith.constant 0 : index
    %389 = arith.index_cast %388 : i32 to index
    %c1_361 = arith.constant 1 : index
    %c0_362 = arith.constant 0 : index
    %390 = vector.load %arg2[%c0_360, %389, %c1_361, %c0_362] : memref<1x11x11x12xbf16, #tpu.memory_space<vmem>>, vector<1x1x8x12xbf16>
    %391 = vector.shape_cast %390 : vector<1x1x8x12xbf16> to vector<8x12xbf16>
    %c9_363 = arith.constant 9 : index
    %c0_364 = arith.constant 0 : index
    %c0_365 = arith.constant 0 : index
    %392 = vector.load %arg3[%c9_363, %c0_364, %c0_365] : memref<16x12x16xbf16, #tpu.memory_space<vmem>>, vector<1x12x16xbf16>
    %393 = vector.shape_cast %392 : vector<1x12x16xbf16> to vector<12x16xbf16>
    %cst_366 = arith.constant dense<0.000000e+00> : vector<8x16xf32>
    %394 = tpu.matmul %391, %393, %cst_366 {dimension_numbers = #tpu.dot_dimension_numbers<[1], [0], [0], [1], [0, 0, 1, 1], [], []>} : vector<8x12xbf16>, vector<12x16xbf16>, vector<8x16xf32> -> vector<8x16xf32>
    %395 = arith.addf %386, %394 : vector<8x16xf32>
    %c2_i32_367 = arith.constant 2 : i32
    %396 = arith.addi %3, %c2_i32_367 : i32
    %c2_i32_368 = arith.constant 2 : i32
    %397 = arith.addi %396, %c2_i32_368 : i32
    %c0_369 = arith.constant 0 : index
    %398 = arith.index_cast %397 : i32 to index
    %c2_370 = arith.constant 2 : index
    %c0_371 = arith.constant 0 : index
    %399 = vector.load %arg2[%c0_369, %398, %c2_370, %c0_371] : memref<1x11x11x12xbf16, #tpu.memory_space<vmem>>, vector<1x1x8x12xbf16>
    %400 = vector.shape_cast %399 : vector<1x1x8x12xbf16> to vector<8x12xbf16>
    %c10_372 = arith.constant 10 : index
    %c0_373 = arith.constant 0 : index
    %c0_374 = arith.constant 0 : index
    %401 = vector.load %arg3[%c10_372, %c0_373, %c0_374] : memref<16x12x16xbf16, #tpu.memory_space<vmem>>, vector<1x12x16xbf16>
    %402 = vector.shape_cast %401 : vector<1x12x16xbf16> to vector<12x16xbf16>
    %cst_375 = arith.constant dense<0.000000e+00> : vector<8x16xf32>
    %403 = tpu.matmul %400, %402, %cst_375 {dimension_numbers = #tpu.dot_dimension_numbers<[1], [0], [0], [1], [0, 0, 1, 1], [], []>} : vector<8x12xbf16>, vector<12x16xbf16>, vector<8x16xf32> -> vector<8x16xf32>
    %404 = arith.addf %395, %403 : vector<8x16xf32>
    %c2_i32_376 = arith.constant 2 : i32
    %405 = arith.addi %3, %c2_i32_376 : i32
    %c2_i32_377 = arith.constant 2 : i32
    %406 = arith.addi %405, %c2_i32_377 : i32
    %c0_378 = arith.constant 0 : index
    %407 = arith.index_cast %406 : i32 to index
    %c3_379 = arith.constant 3 : index
    %c0_380 = arith.constant 0 : index
    %408 = vector.load %arg2[%c0_378, %407, %c3_379, %c0_380] : memref<1x11x11x12xbf16, #tpu.memory_space<vmem>>, vector<1x1x8x12xbf16>
    %409 = vector.shape_cast %408 : vector<1x1x8x12xbf16> to vector<8x12xbf16>
    %c11_381 = arith.constant 11 : index
    %c0_382 = arith.constant 0 : index
    %c0_383 = arith.constant 0 : index
    %410 = vector.load %arg3[%c11_381, %c0_382, %c0_383] : memref<16x12x16xbf16, #tpu.memory_space<vmem>>, vector<1x12x16xbf16>
    %411 = vector.shape_cast %410 : vector<1x12x16xbf16> to vector<12x16xbf16>
    %cst_384 = arith.constant dense<0.000000e+00> : vector<8x16xf32>
    %412 = tpu.matmul %409, %411, %cst_384 {dimension_numbers = #tpu.dot_dimension_numbers<[1], [0], [0], [1], [0, 0, 1, 1], [], []>} : vector<8x12xbf16>, vector<12x16xbf16>, vector<8x16xf32> -> vector<8x16xf32>
    %413 = arith.addf %404, %412 : vector<8x16xf32>
    %c2_i32_385 = arith.constant 2 : i32
    %414 = arith.addi %3, %c2_i32_385 : i32
    %c3_i32_386 = arith.constant 3 : i32
    %415 = arith.addi %414, %c3_i32_386 : i32
    %c0_387 = arith.constant 0 : index
    %416 = arith.index_cast %415 : i32 to index
    %c0_388 = arith.constant 0 : index
    %c0_389 = arith.constant 0 : index
    %417 = vector.load %arg2[%c0_387, %416, %c0_388, %c0_389] : memref<1x11x11x12xbf16, #tpu.memory_space<vmem>>, vector<1x1x8x12xbf16>
    %418 = vector.shape_cast %417 : vector<1x1x8x12xbf16> to vector<8x12xbf16>
    %c12_390 = arith.constant 12 : index
    %c0_391 = arith.constant 0 : index
    %c0_392 = arith.constant 0 : index
    %419 = vector.load %arg3[%c12_390, %c0_391, %c0_392] : memref<16x12x16xbf16, #tpu.memory_space<vmem>>, vector<1x12x16xbf16>
    %420 = vector.shape_cast %419 : vector<1x12x16xbf16> to vector<12x16xbf16>
    %cst_393 = arith.constant dense<0.000000e+00> : vector<8x16xf32>
    %421 = tpu.matmul %418, %420, %cst_393 {dimension_numbers = #tpu.dot_dimension_numbers<[1], [0], [0], [1], [0, 0, 1, 1], [], []>} : vector<8x12xbf16>, vector<12x16xbf16>, vector<8x16xf32> -> vector<8x16xf32>
    %422 = arith.addf %413, %421 : vector<8x16xf32>
    %c2_i32_394 = arith.constant 2 : i32
    %423 = arith.addi %3, %c2_i32_394 : i32
    %c3_i32_395 = arith.constant 3 : i32
    %424 = arith.addi %423, %c3_i32_395 : i32
    %c0_396 = arith.constant 0 : index
    %425 = arith.index_cast %424 : i32 to index
    %c1_397 = arith.constant 1 : index
    %c0_398 = arith.constant 0 : index
    %426 = vector.load %arg2[%c0_396, %425, %c1_397, %c0_398] : memref<1x11x11x12xbf16, #tpu.memory_space<vmem>>, vector<1x1x8x12xbf16>
    %427 = vector.shape_cast %426 : vector<1x1x8x12xbf16> to vector<8x12xbf16>
    %c13_399 = arith.constant 13 : index
    %c0_400 = arith.constant 0 : index
    %c0_401 = arith.constant 0 : index
    %428 = vector.load %arg3[%c13_399, %c0_400, %c0_401] : memref<16x12x16xbf16, #tpu.memory_space<vmem>>, vector<1x12x16xbf16>
    %429 = vector.shape_cast %428 : vector<1x12x16xbf16> to vector<12x16xbf16>
    %cst_402 = arith.constant dense<0.000000e+00> : vector<8x16xf32>
    %430 = tpu.matmul %427, %429, %cst_402 {dimension_numbers = #tpu.dot_dimension_numbers<[1], [0], [0], [1], [0, 0, 1, 1], [], []>} : vector<8x12xbf16>, vector<12x16xbf16>, vector<8x16xf32> -> vector<8x16xf32>
    %431 = arith.addf %422, %430 : vector<8x16xf32>
    %c2_i32_403 = arith.constant 2 : i32
    %432 = arith.addi %3, %c2_i32_403 : i32
    %c3_i32_404 = arith.constant 3 : i32
    %433 = arith.addi %432, %c3_i32_404 : i32
    %c0_405 = arith.constant 0 : index
    %434 = arith.index_cast %433 : i32 to index
    %c2_406 = arith.constant 2 : index
    %c0_407 = arith.constant 0 : index
    %435 = vector.load %arg2[%c0_405, %434, %c2_406, %c0_407] : memref<1x11x11x12xbf16, #tpu.memory_space<vmem>>, vector<1x1x8x12xbf16>
    %436 = vector.shape_cast %435 : vector<1x1x8x12xbf16> to vector<8x12xbf16>
    %c14_408 = arith.constant 14 : index
    %c0_409 = arith.constant 0 : index
    %c0_410 = arith.constant 0 : index
    %437 = vector.load %arg3[%c14_408, %c0_409, %c0_410] : memref<16x12x16xbf16, #tpu.memory_space<vmem>>, vector<1x12x16xbf16>
    %438 = vector.shape_cast %437 : vector<1x12x16xbf16> to vector<12x16xbf16>
    %cst_411 = arith.constant dense<0.000000e+00> : vector<8x16xf32>
    %439 = tpu.matmul %436, %438, %cst_411 {dimension_numbers = #tpu.dot_dimension_numbers<[1], [0], [0], [1], [0, 0, 1, 1], [], []>} : vector<8x12xbf16>, vector<12x16xbf16>, vector<8x16xf32> -> vector<8x16xf32>
    %440 = arith.addf %431, %439 : vector<8x16xf32>
    %c2_i32_412 = arith.constant 2 : i32
    %441 = arith.addi %3, %c2_i32_412 : i32
    %c3_i32_413 = arith.constant 3 : i32
    %442 = arith.addi %441, %c3_i32_413 : i32
    %c0_414 = arith.constant 0 : index
    %443 = arith.index_cast %442 : i32 to index
    %c3_415 = arith.constant 3 : index
    %c0_416 = arith.constant 0 : index
    %444 = vector.load %arg2[%c0_414, %443, %c3_415, %c0_416] : memref<1x11x11x12xbf16, #tpu.memory_space<vmem>>, vector<1x1x8x12xbf16>
    %445 = vector.shape_cast %444 : vector<1x1x8x12xbf16> to vector<8x12xbf16>
    %c15_417 = arith.constant 15 : index
    %c0_418 = arith.constant 0 : index
    %c0_419 = arith.constant 0 : index
    %446 = vector.load %arg3[%c15_417, %c0_418, %c0_419] : memref<16x12x16xbf16, #tpu.memory_space<vmem>>, vector<1x12x16xbf16>
    %447 = vector.shape_cast %446 : vector<1x12x16xbf16> to vector<12x16xbf16>
    %cst_420 = arith.constant dense<0.000000e+00> : vector<8x16xf32>
    %448 = tpu.matmul %445, %447, %cst_420 {dimension_numbers = #tpu.dot_dimension_numbers<[1], [0], [0], [1], [0, 0, 1, 1], [], []>} : vector<8x12xbf16>, vector<12x16xbf16>, vector<8x16xf32> -> vector<8x16xf32>
    %449 = arith.addf %440, %448 : vector<8x16xf32>
    %cst_421 = arith.constant 0.000000e+00 : f32
    %450 = vector.broadcast %cst_421 : f32 to vector<8x16xf32>
    %451 = arith.maximumf %449, %450 : vector<8x16xf32>
    %cst_422 = arith.constant dense<0.000000e+00> : vector<16xf32>
    %452 = vector.multi_reduction <add>, %451, %cst_422 [0] : vector<8x16xf32> to vector<16xf32>
    %453 = vector.shape_cast %452 : vector<16xf32> to vector<1x16xf32>
    %454 = arith.addf %304, %453 : vector<1x16xf32>
    %cst_423 = arith.constant 0.000000e+00 : f32
    %455 = vector.broadcast %cst_423 : f32 to vector<8x16xf32>
    %c3_i32_424 = arith.constant 3 : i32
    %456 = arith.addi %3, %c3_i32_424 : i32
    %c0_i32_425 = arith.constant 0 : i32
    %457 = arith.addi %456, %c0_i32_425 : i32
    %c0_426 = arith.constant 0 : index
    %458 = arith.index_cast %457 : i32 to index
    %c0_427 = arith.constant 0 : index
    %c0_428 = arith.constant 0 : index
    %459 = vector.load %arg2[%c0_426, %458, %c0_427, %c0_428] : memref<1x11x11x12xbf16, #tpu.memory_space<vmem>>, vector<1x1x8x12xbf16>
    %460 = vector.shape_cast %459 : vector<1x1x8x12xbf16> to vector<8x12xbf16>
    %c0_429 = arith.constant 0 : index
    %c0_430 = arith.constant 0 : index
    %c0_431 = arith.constant 0 : index
    %461 = vector.load %arg3[%c0_429, %c0_430, %c0_431] : memref<16x12x16xbf16, #tpu.memory_space<vmem>>, vector<1x12x16xbf16>
    %462 = vector.shape_cast %461 : vector<1x12x16xbf16> to vector<12x16xbf16>
    %cst_432 = arith.constant dense<0.000000e+00> : vector<8x16xf32>
    %463 = tpu.matmul %460, %462, %cst_432 {dimension_numbers = #tpu.dot_dimension_numbers<[1], [0], [0], [1], [0, 0, 1, 1], [], []>} : vector<8x12xbf16>, vector<12x16xbf16>, vector<8x16xf32> -> vector<8x16xf32>
    %464 = arith.addf %455, %463 : vector<8x16xf32>
    %c3_i32_433 = arith.constant 3 : i32
    %465 = arith.addi %3, %c3_i32_433 : i32
    %c0_i32_434 = arith.constant 0 : i32
    %466 = arith.addi %465, %c0_i32_434 : i32
    %c0_435 = arith.constant 0 : index
    %467 = arith.index_cast %466 : i32 to index
    %c1_436 = arith.constant 1 : index
    %c0_437 = arith.constant 0 : index
    %468 = vector.load %arg2[%c0_435, %467, %c1_436, %c0_437] : memref<1x11x11x12xbf16, #tpu.memory_space<vmem>>, vector<1x1x8x12xbf16>
    %469 = vector.shape_cast %468 : vector<1x1x8x12xbf16> to vector<8x12xbf16>
    %c1_438 = arith.constant 1 : index
    %c0_439 = arith.constant 0 : index
    %c0_440 = arith.constant 0 : index
    %470 = vector.load %arg3[%c1_438, %c0_439, %c0_440] : memref<16x12x16xbf16, #tpu.memory_space<vmem>>, vector<1x12x16xbf16>
    %471 = vector.shape_cast %470 : vector<1x12x16xbf16> to vector<12x16xbf16>
    %cst_441 = arith.constant dense<0.000000e+00> : vector<8x16xf32>
    %472 = tpu.matmul %469, %471, %cst_441 {dimension_numbers = #tpu.dot_dimension_numbers<[1], [0], [0], [1], [0, 0, 1, 1], [], []>} : vector<8x12xbf16>, vector<12x16xbf16>, vector<8x16xf32> -> vector<8x16xf32>
    %473 = arith.addf %464, %472 : vector<8x16xf32>
    %c3_i32_442 = arith.constant 3 : i32
    %474 = arith.addi %3, %c3_i32_442 : i32
    %c0_i32_443 = arith.constant 0 : i32
    %475 = arith.addi %474, %c0_i32_443 : i32
    %c0_444 = arith.constant 0 : index
    %476 = arith.index_cast %475 : i32 to index
    %c2_445 = arith.constant 2 : index
    %c0_446 = arith.constant 0 : index
    %477 = vector.load %arg2[%c0_444, %476, %c2_445, %c0_446] : memref<1x11x11x12xbf16, #tpu.memory_space<vmem>>, vector<1x1x8x12xbf16>
    %478 = vector.shape_cast %477 : vector<1x1x8x12xbf16> to vector<8x12xbf16>
    %c2_447 = arith.constant 2 : index
    %c0_448 = arith.constant 0 : index
    %c0_449 = arith.constant 0 : index
    %479 = vector.load %arg3[%c2_447, %c0_448, %c0_449] : memref<16x12x16xbf16, #tpu.memory_space<vmem>>, vector<1x12x16xbf16>
    %480 = vector.shape_cast %479 : vector<1x12x16xbf16> to vector<12x16xbf16>
    %cst_450 = arith.constant dense<0.000000e+00> : vector<8x16xf32>
    %481 = tpu.matmul %478, %480, %cst_450 {dimension_numbers = #tpu.dot_dimension_numbers<[1], [0], [0], [1], [0, 0, 1, 1], [], []>} : vector<8x12xbf16>, vector<12x16xbf16>, vector<8x16xf32> -> vector<8x16xf32>
    %482 = arith.addf %473, %481 : vector<8x16xf32>
    %c3_i32_451 = arith.constant 3 : i32
    %483 = arith.addi %3, %c3_i32_451 : i32
    %c0_i32_452 = arith.constant 0 : i32
    %484 = arith.addi %483, %c0_i32_452 : i32
    %c0_453 = arith.constant 0 : index
    %485 = arith.index_cast %484 : i32 to index
    %c3_454 = arith.constant 3 : index
    %c0_455 = arith.constant 0 : index
    %486 = vector.load %arg2[%c0_453, %485, %c3_454, %c0_455] : memref<1x11x11x12xbf16, #tpu.memory_space<vmem>>, vector<1x1x8x12xbf16>
    %487 = vector.shape_cast %486 : vector<1x1x8x12xbf16> to vector<8x12xbf16>
    %c3_456 = arith.constant 3 : index
    %c0_457 = arith.constant 0 : index
    %c0_458 = arith.constant 0 : index
    %488 = vector.load %arg3[%c3_456, %c0_457, %c0_458] : memref<16x12x16xbf16, #tpu.memory_space<vmem>>, vector<1x12x16xbf16>
    %489 = vector.shape_cast %488 : vector<1x12x16xbf16> to vector<12x16xbf16>
    %cst_459 = arith.constant dense<0.000000e+00> : vector<8x16xf32>
    %490 = tpu.matmul %487, %489, %cst_459 {dimension_numbers = #tpu.dot_dimension_numbers<[1], [0], [0], [1], [0, 0, 1, 1], [], []>} : vector<8x12xbf16>, vector<12x16xbf16>, vector<8x16xf32> -> vector<8x16xf32>
    %491 = arith.addf %482, %490 : vector<8x16xf32>
    %c3_i32_460 = arith.constant 3 : i32
    %492 = arith.addi %3, %c3_i32_460 : i32
    %c1_i32_461 = arith.constant 1 : i32
    %493 = arith.addi %492, %c1_i32_461 : i32
    %c0_462 = arith.constant 0 : index
    %494 = arith.index_cast %493 : i32 to index
    %c0_463 = arith.constant 0 : index
    %c0_464 = arith.constant 0 : index
    %495 = vector.load %arg2[%c0_462, %494, %c0_463, %c0_464] : memref<1x11x11x12xbf16, #tpu.memory_space<vmem>>, vector<1x1x8x12xbf16>
    %496 = vector.shape_cast %495 : vector<1x1x8x12xbf16> to vector<8x12xbf16>
    %c4_465 = arith.constant 4 : index
    %c0_466 = arith.constant 0 : index
    %c0_467 = arith.constant 0 : index
    %497 = vector.load %arg3[%c4_465, %c0_466, %c0_467] : memref<16x12x16xbf16, #tpu.memory_space<vmem>>, vector<1x12x16xbf16>
    %498 = vector.shape_cast %497 : vector<1x12x16xbf16> to vector<12x16xbf16>
    %cst_468 = arith.constant dense<0.000000e+00> : vector<8x16xf32>
    %499 = tpu.matmul %496, %498, %cst_468 {dimension_numbers = #tpu.dot_dimension_numbers<[1], [0], [0], [1], [0, 0, 1, 1], [], []>} : vector<8x12xbf16>, vector<12x16xbf16>, vector<8x16xf32> -> vector<8x16xf32>
    %500 = arith.addf %491, %499 : vector<8x16xf32>
    %c3_i32_469 = arith.constant 3 : i32
    %501 = arith.addi %3, %c3_i32_469 : i32
    %c1_i32_470 = arith.constant 1 : i32
    %502 = arith.addi %501, %c1_i32_470 : i32
    %c0_471 = arith.constant 0 : index
    %503 = arith.index_cast %502 : i32 to index
    %c1_472 = arith.constant 1 : index
    %c0_473 = arith.constant 0 : index
    %504 = vector.load %arg2[%c0_471, %503, %c1_472, %c0_473] : memref<1x11x11x12xbf16, #tpu.memory_space<vmem>>, vector<1x1x8x12xbf16>
    %505 = vector.shape_cast %504 : vector<1x1x8x12xbf16> to vector<8x12xbf16>
    %c5_474 = arith.constant 5 : index
    %c0_475 = arith.constant 0 : index
    %c0_476 = arith.constant 0 : index
    %506 = vector.load %arg3[%c5_474, %c0_475, %c0_476] : memref<16x12x16xbf16, #tpu.memory_space<vmem>>, vector<1x12x16xbf16>
    %507 = vector.shape_cast %506 : vector<1x12x16xbf16> to vector<12x16xbf16>
    %cst_477 = arith.constant dense<0.000000e+00> : vector<8x16xf32>
    %508 = tpu.matmul %505, %507, %cst_477 {dimension_numbers = #tpu.dot_dimension_numbers<[1], [0], [0], [1], [0, 0, 1, 1], [], []>} : vector<8x12xbf16>, vector<12x16xbf16>, vector<8x16xf32> -> vector<8x16xf32>
    %509 = arith.addf %500, %508 : vector<8x16xf32>
    %c3_i32_478 = arith.constant 3 : i32
    %510 = arith.addi %3, %c3_i32_478 : i32
    %c1_i32_479 = arith.constant 1 : i32
    %511 = arith.addi %510, %c1_i32_479 : i32
    %c0_480 = arith.constant 0 : index
    %512 = arith.index_cast %511 : i32 to index
    %c2_481 = arith.constant 2 : index
    %c0_482 = arith.constant 0 : index
    %513 = vector.load %arg2[%c0_480, %512, %c2_481, %c0_482] : memref<1x11x11x12xbf16, #tpu.memory_space<vmem>>, vector<1x1x8x12xbf16>
    %514 = vector.shape_cast %513 : vector<1x1x8x12xbf16> to vector<8x12xbf16>
    %c6_483 = arith.constant 6 : index
    %c0_484 = arith.constant 0 : index
    %c0_485 = arith.constant 0 : index
    %515 = vector.load %arg3[%c6_483, %c0_484, %c0_485] : memref<16x12x16xbf16, #tpu.memory_space<vmem>>, vector<1x12x16xbf16>
    %516 = vector.shape_cast %515 : vector<1x12x16xbf16> to vector<12x16xbf16>
    %cst_486 = arith.constant dense<0.000000e+00> : vector<8x16xf32>
    %517 = tpu.matmul %514, %516, %cst_486 {dimension_numbers = #tpu.dot_dimension_numbers<[1], [0], [0], [1], [0, 0, 1, 1], [], []>} : vector<8x12xbf16>, vector<12x16xbf16>, vector<8x16xf32> -> vector<8x16xf32>
    %518 = arith.addf %509, %517 : vector<8x16xf32>
    %c3_i32_487 = arith.constant 3 : i32
    %519 = arith.addi %3, %c3_i32_487 : i32
    %c1_i32_488 = arith.constant 1 : i32
    %520 = arith.addi %519, %c1_i32_488 : i32
    %c0_489 = arith.constant 0 : index
    %521 = arith.index_cast %520 : i32 to index
    %c3_490 = arith.constant 3 : index
    %c0_491 = arith.constant 0 : index
    %522 = vector.load %arg2[%c0_489, %521, %c3_490, %c0_491] : memref<1x11x11x12xbf16, #tpu.memory_space<vmem>>, vector<1x1x8x12xbf16>
    %523 = vector.shape_cast %522 : vector<1x1x8x12xbf16> to vector<8x12xbf16>
    %c7_492 = arith.constant 7 : index
    %c0_493 = arith.constant 0 : index
    %c0_494 = arith.constant 0 : index
    %524 = vector.load %arg3[%c7_492, %c0_493, %c0_494] : memref<16x12x16xbf16, #tpu.memory_space<vmem>>, vector<1x12x16xbf16>
    %525 = vector.shape_cast %524 : vector<1x12x16xbf16> to vector<12x16xbf16>
    %cst_495 = arith.constant dense<0.000000e+00> : vector<8x16xf32>
    %526 = tpu.matmul %523, %525, %cst_495 {dimension_numbers = #tpu.dot_dimension_numbers<[1], [0], [0], [1], [0, 0, 1, 1], [], []>} : vector<8x12xbf16>, vector<12x16xbf16>, vector<8x16xf32> -> vector<8x16xf32>
    %527 = arith.addf %518, %526 : vector<8x16xf32>
    %c3_i32_496 = arith.constant 3 : i32
    %528 = arith.addi %3, %c3_i32_496 : i32
    %c2_i32_497 = arith.constant 2 : i32
    %529 = arith.addi %528, %c2_i32_497 : i32
    %c0_498 = arith.constant 0 : index
    %530 = arith.index_cast %529 : i32 to index
    %c0_499 = arith.constant 0 : index
    %c0_500 = arith.constant 0 : index
    %531 = vector.load %arg2[%c0_498, %530, %c0_499, %c0_500] : memref<1x11x11x12xbf16, #tpu.memory_space<vmem>>, vector<1x1x8x12xbf16>
    %532 = vector.shape_cast %531 : vector<1x1x8x12xbf16> to vector<8x12xbf16>
    %c8_501 = arith.constant 8 : index
    %c0_502 = arith.constant 0 : index
    %c0_503 = arith.constant 0 : index
    %533 = vector.load %arg3[%c8_501, %c0_502, %c0_503] : memref<16x12x16xbf16, #tpu.memory_space<vmem>>, vector<1x12x16xbf16>
    %534 = vector.shape_cast %533 : vector<1x12x16xbf16> to vector<12x16xbf16>
    %cst_504 = arith.constant dense<0.000000e+00> : vector<8x16xf32>
    %535 = tpu.matmul %532, %534, %cst_504 {dimension_numbers = #tpu.dot_dimension_numbers<[1], [0], [0], [1], [0, 0, 1, 1], [], []>} : vector<8x12xbf16>, vector<12x16xbf16>, vector<8x16xf32> -> vector<8x16xf32>
    %536 = arith.addf %527, %535 : vector<8x16xf32>
    %c3_i32_505 = arith.constant 3 : i32
    %537 = arith.addi %3, %c3_i32_505 : i32
    %c2_i32_506 = arith.constant 2 : i32
    %538 = arith.addi %537, %c2_i32_506 : i32
    %c0_507 = arith.constant 0 : index
    %539 = arith.index_cast %538 : i32 to index
    %c1_508 = arith.constant 1 : index
    %c0_509 = arith.constant 0 : index
    %540 = vector.load %arg2[%c0_507, %539, %c1_508, %c0_509] : memref<1x11x11x12xbf16, #tpu.memory_space<vmem>>, vector<1x1x8x12xbf16>
    %541 = vector.shape_cast %540 : vector<1x1x8x12xbf16> to vector<8x12xbf16>
    %c9_510 = arith.constant 9 : index
    %c0_511 = arith.constant 0 : index
    %c0_512 = arith.constant 0 : index
    %542 = vector.load %arg3[%c9_510, %c0_511, %c0_512] : memref<16x12x16xbf16, #tpu.memory_space<vmem>>, vector<1x12x16xbf16>
    %543 = vector.shape_cast %542 : vector<1x12x16xbf16> to vector<12x16xbf16>
    %cst_513 = arith.constant dense<0.000000e+00> : vector<8x16xf32>
    %544 = tpu.matmul %541, %543, %cst_513 {dimension_numbers = #tpu.dot_dimension_numbers<[1], [0], [0], [1], [0, 0, 1, 1], [], []>} : vector<8x12xbf16>, vector<12x16xbf16>, vector<8x16xf32> -> vector<8x16xf32>
    %545 = arith.addf %536, %544 : vector<8x16xf32>
    %c3_i32_514 = arith.constant 3 : i32
    %546 = arith.addi %3, %c3_i32_514 : i32
    %c2_i32_515 = arith.constant 2 : i32
    %547 = arith.addi %546, %c2_i32_515 : i32
    %c0_516 = arith.constant 0 : index
    %548 = arith.index_cast %547 : i32 to index
    %c2_517 = arith.constant 2 : index
    %c0_518 = arith.constant 0 : index
    %549 = vector.load %arg2[%c0_516, %548, %c2_517, %c0_518] : memref<1x11x11x12xbf16, #tpu.memory_space<vmem>>, vector<1x1x8x12xbf16>
    %550 = vector.shape_cast %549 : vector<1x1x8x12xbf16> to vector<8x12xbf16>
    %c10_519 = arith.constant 10 : index
    %c0_520 = arith.constant 0 : index
    %c0_521 = arith.constant 0 : index
    %551 = vector.load %arg3[%c10_519, %c0_520, %c0_521] : memref<16x12x16xbf16, #tpu.memory_space<vmem>>, vector<1x12x16xbf16>
    %552 = vector.shape_cast %551 : vector<1x12x16xbf16> to vector<12x16xbf16>
    %cst_522 = arith.constant dense<0.000000e+00> : vector<8x16xf32>
    %553 = tpu.matmul %550, %552, %cst_522 {dimension_numbers = #tpu.dot_dimension_numbers<[1], [0], [0], [1], [0, 0, 1, 1], [], []>} : vector<8x12xbf16>, vector<12x16xbf16>, vector<8x16xf32> -> vector<8x16xf32>
    %554 = arith.addf %545, %553 : vector<8x16xf32>
    %c3_i32_523 = arith.constant 3 : i32
    %555 = arith.addi %3, %c3_i32_523 : i32
    %c2_i32_524 = arith.constant 2 : i32
    %556 = arith.addi %555, %c2_i32_524 : i32
    %c0_525 = arith.constant 0 : index
    %557 = arith.index_cast %556 : i32 to index
    %c3_526 = arith.constant 3 : index
    %c0_527 = arith.constant 0 : index
    %558 = vector.load %arg2[%c0_525, %557, %c3_526, %c0_527] : memref<1x11x11x12xbf16, #tpu.memory_space<vmem>>, vector<1x1x8x12xbf16>
    %559 = vector.shape_cast %558 : vector<1x1x8x12xbf16> to vector<8x12xbf16>
    %c11_528 = arith.constant 11 : index
    %c0_529 = arith.constant 0 : index
    %c0_530 = arith.constant 0 : index
    %560 = vector.load %arg3[%c11_528, %c0_529, %c0_530] : memref<16x12x16xbf16, #tpu.memory_space<vmem>>, vector<1x12x16xbf16>
    %561 = vector.shape_cast %560 : vector<1x12x16xbf16> to vector<12x16xbf16>
    %cst_531 = arith.constant dense<0.000000e+00> : vector<8x16xf32>
    %562 = tpu.matmul %559, %561, %cst_531 {dimension_numbers = #tpu.dot_dimension_numbers<[1], [0], [0], [1], [0, 0, 1, 1], [], []>} : vector<8x12xbf16>, vector<12x16xbf16>, vector<8x16xf32> -> vector<8x16xf32>
    %563 = arith.addf %554, %562 : vector<8x16xf32>
    %c3_i32_532 = arith.constant 3 : i32
    %564 = arith.addi %3, %c3_i32_532 : i32
    %c3_i32_533 = arith.constant 3 : i32
    %565 = arith.addi %564, %c3_i32_533 : i32
    %c0_534 = arith.constant 0 : index
    %566 = arith.index_cast %565 : i32 to index
    %c0_535 = arith.constant 0 : index
    %c0_536 = arith.constant 0 : index
    %567 = vector.load %arg2[%c0_534, %566, %c0_535, %c0_536] : memref<1x11x11x12xbf16, #tpu.memory_space<vmem>>, vector<1x1x8x12xbf16>
    %568 = vector.shape_cast %567 : vector<1x1x8x12xbf16> to vector<8x12xbf16>
    %c12_537 = arith.constant 12 : index
    %c0_538 = arith.constant 0 : index
    %c0_539 = arith.constant 0 : index
    %569 = vector.load %arg3[%c12_537, %c0_538, %c0_539] : memref<16x12x16xbf16, #tpu.memory_space<vmem>>, vector<1x12x16xbf16>
    %570 = vector.shape_cast %569 : vector<1x12x16xbf16> to vector<12x16xbf16>
    %cst_540 = arith.constant dense<0.000000e+00> : vector<8x16xf32>
    %571 = tpu.matmul %568, %570, %cst_540 {dimension_numbers = #tpu.dot_dimension_numbers<[1], [0], [0], [1], [0, 0, 1, 1], [], []>} : vector<8x12xbf16>, vector<12x16xbf16>, vector<8x16xf32> -> vector<8x16xf32>
    %572 = arith.addf %563, %571 : vector<8x16xf32>
    %c3_i32_541 = arith.constant 3 : i32
    %573 = arith.addi %3, %c3_i32_541 : i32
    %c3_i32_542 = arith.constant 3 : i32
    %574 = arith.addi %573, %c3_i32_542 : i32
    %c0_543 = arith.constant 0 : index
    %575 = arith.index_cast %574 : i32 to index
    %c1_544 = arith.constant 1 : index
    %c0_545 = arith.constant 0 : index
    %576 = vector.load %arg2[%c0_543, %575, %c1_544, %c0_545] : memref<1x11x11x12xbf16, #tpu.memory_space<vmem>>, vector<1x1x8x12xbf16>
    %577 = vector.shape_cast %576 : vector<1x1x8x12xbf16> to vector<8x12xbf16>
    %c13_546 = arith.constant 13 : index
    %c0_547 = arith.constant 0 : index
    %c0_548 = arith.constant 0 : index
    %578 = vector.load %arg3[%c13_546, %c0_547, %c0_548] : memref<16x12x16xbf16, #tpu.memory_space<vmem>>, vector<1x12x16xbf16>
    %579 = vector.shape_cast %578 : vector<1x12x16xbf16> to vector<12x16xbf16>
    %cst_549 = arith.constant dense<0.000000e+00> : vector<8x16xf32>
    %580 = tpu.matmul %577, %579, %cst_549 {dimension_numbers = #tpu.dot_dimension_numbers<[1], [0], [0], [1], [0, 0, 1, 1], [], []>} : vector<8x12xbf16>, vector<12x16xbf16>, vector<8x16xf32> -> vector<8x16xf32>
    %581 = arith.addf %572, %580 : vector<8x16xf32>
    %c3_i32_550 = arith.constant 3 : i32
    %582 = arith.addi %3, %c3_i32_550 : i32
    %c3_i32_551 = arith.constant 3 : i32
    %583 = arith.addi %582, %c3_i32_551 : i32
    %c0_552 = arith.constant 0 : index
    %584 = arith.index_cast %583 : i32 to index
    %c2_553 = arith.constant 2 : index
    %c0_554 = arith.constant 0 : index
    %585 = vector.load %arg2[%c0_552, %584, %c2_553, %c0_554] : memref<1x11x11x12xbf16, #tpu.memory_space<vmem>>, vector<1x1x8x12xbf16>
    %586 = vector.shape_cast %585 : vector<1x1x8x12xbf16> to vector<8x12xbf16>
    %c14_555 = arith.constant 14 : index
    %c0_556 = arith.constant 0 : index
    %c0_557 = arith.constant 0 : index
    %587 = vector.load %arg3[%c14_555, %c0_556, %c0_557] : memref<16x12x16xbf16, #tpu.memory_space<vmem>>, vector<1x12x16xbf16>
    %588 = vector.shape_cast %587 : vector<1x12x16xbf16> to vector<12x16xbf16>
    %cst_558 = arith.constant dense<0.000000e+00> : vector<8x16xf32>
    %589 = tpu.matmul %586, %588, %cst_558 {dimension_numbers = #tpu.dot_dimension_numbers<[1], [0], [0], [1], [0, 0, 1, 1], [], []>} : vector<8x12xbf16>, vector<12x16xbf16>, vector<8x16xf32> -> vector<8x16xf32>
    %590 = arith.addf %581, %589 : vector<8x16xf32>
    %c3_i32_559 = arith.constant 3 : i32
    %591 = arith.addi %3, %c3_i32_559 : i32
    %c3_i32_560 = arith.constant 3 : i32
    %592 = arith.addi %591, %c3_i32_560 : i32
    %c0_561 = arith.constant 0 : index
    %593 = arith.index_cast %592 : i32 to index
    %c3_562 = arith.constant 3 : index
    %c0_563 = arith.constant 0 : index
    %594 = vector.load %arg2[%c0_561, %593, %c3_562, %c0_563] : memref<1x11x11x12xbf16, #tpu.memory_space<vmem>>, vector<1x1x8x12xbf16>
    %595 = vector.shape_cast %594 : vector<1x1x8x12xbf16> to vector<8x12xbf16>
    %c15_564 = arith.constant 15 : index
    %c0_565 = arith.constant 0 : index
    %c0_566 = arith.constant 0 : index
    %596 = vector.load %arg3[%c15_564, %c0_565, %c0_566] : memref<16x12x16xbf16, #tpu.memory_space<vmem>>, vector<1x12x16xbf16>
    %597 = vector.shape_cast %596 : vector<1x12x16xbf16> to vector<12x16xbf16>
    %cst_567 = arith.constant dense<0.000000e+00> : vector<8x16xf32>
    %598 = tpu.matmul %595, %597, %cst_567 {dimension_numbers = #tpu.dot_dimension_numbers<[1], [0], [0], [1], [0, 0, 1, 1], [], []>} : vector<8x12xbf16>, vector<12x16xbf16>, vector<8x16xf32> -> vector<8x16xf32>
    %599 = arith.addf %590, %598 : vector<8x16xf32>
    %cst_568 = arith.constant 0.000000e+00 : f32
    %600 = vector.broadcast %cst_568 : f32 to vector<8x16xf32>
    %601 = arith.maximumf %599, %600 : vector<8x16xf32>
    %cst_569 = arith.constant dense<0.000000e+00> : vector<16xf32>
    %602 = vector.multi_reduction <add>, %601, %cst_569 [0] : vector<8x16xf32> to vector<16xf32>
    %603 = vector.shape_cast %602 : vector<16xf32> to vector<1x16xf32>
    %604 = arith.addf %454, %603 : vector<1x16xf32>
    %c0_570 = arith.constant 0 : index
    %c0_571 = arith.constant 0 : index
    %605 = vector.load %arg7[%c0_570, %c0_571] : memref<1x16xf32, #tpu.memory_space<vmem>>, vector<1x16xf32>
    %606 = arith.addf %605, %604 : vector<1x16xf32>
    %c0_572 = arith.constant 0 : index
    %c0_573 = arith.constant 0 : index
    %607 = vector.load %arg7[%c0_572, %c0_573] : memref<1x16xf32, #tpu.memory_space<vmem>>, vector<1x16xf32>
    tpu.vector_store %arg7[%c0_572, %c0_573], %606 {strides = array<i32>} : memref<1x16xf32, #tpu.memory_space<vmem>>, vector<1x16xf32>,
    %c1_i32_574 = arith.constant 1 : i32
    %608 = arith.cmpi eq, %arg1, %c1_i32_574 : i32
    %609 = arith.extui %608 : i1 to i32
    %c0_i32_575 = arith.constant 0 : i32
    %610 = arith.cmpi ne, %609, %c0_i32_575 : i32
    scf.if %610 {
      %c0_576 = arith.constant 0 : index
      %c0_577 = arith.constant 0 : index
      %611 = vector.load %arg7[%c0_576, %c0_577] : memref<1x16xf32, #tpu.memory_space<vmem>>, vector<1x16xf32>
      %cst_578 = arith.constant 1.562500e-02 : f32
      %612 = vector.broadcast %cst_578 : f32 to vector<1x16xf32>
      %613 = arith.mulf %611, %612 : vector<1x16xf32>
      %c0_579 = arith.constant 0 : index
      %c0_580 = arith.constant 0 : index
      %614 = vector.load %arg4[%c0_579, %c0_580] : memref<16x14xf32, #tpu.memory_space<vmem>>, vector<16x14xf32>
      %cst_581 = arith.constant dense<0.000000e+00> : vector<1x14xf32>
      %615 = tpu.matmul %613, %614, %cst_581 {dimension_numbers = #tpu.dot_dimension_numbers<[1], [0], [0], [1], [0, 0, 1, 1], [], []>} : vector<1x16xf32>, vector<16x14xf32>, vector<1x14xf32> -> vector<1x14xf32>
      %c0_582 = arith.constant 0 : index
      %c0_583 = arith.constant 0 : index
      %616 = vector.load %arg5[%c0_582, %c0_583] : memref<1x14xf32, #tpu.memory_space<vmem>>, vector<1x14xf32>
      %617 = arith.addf %615, %616 : vector<1x14xf32>
      %c0_584 = arith.constant 0 : index
      %c0_585 = arith.constant 0 : index
      %c0_586 = arith.constant 0 : index
      %618 = vector.load %arg6[%c0_584, %c0_585, %c0_586] : memref<1x1x14xf32, #tpu.memory_space<vmem>>, vector<1x1x14xf32>
      %619 = vector.shape_cast %618 : vector<1x1x14xf32> to vector<1x14xf32>
      %620 = vector.shape_cast %617 : vector<1x14xf32> to vector<1x1x14xf32>
      tpu.vector_store %arg6[%c0_584, %c0_585, %c0_586], %620 {strides = array<i32>} : memref<1x1x14xf32, #tpu.memory_space<vmem>>, vector<1x1x14xf32>,
    } else {
    }
    return
  }
  func.func @transform_0(%arg0: i32, %arg1: i32) -> (i32, i32, i32, i32) {
    %c0_i32 = arith.constant 0 : i32
    %c0_i32_0 = arith.constant 0 : i32
    %c0_i32_1 = arith.constant 0 : i32
    %c0_i32_2 = arith.constant 0 : i32
    return %arg0, %c0_i32, %c0_i32_0, %c0_i32_1 : i32, i32, i32, i32
  }
  func.func @transform_1(%arg0: i32, %arg1: i32) -> (i32, i32, i32) {
    %c0_i32 = arith.constant 0 : i32
    %c0_i32_0 = arith.constant 0 : i32
    %c0_i32_1 = arith.constant 0 : i32
    %c0_i32_2 = arith.constant 0 : i32
    return %c0_i32, %c0_i32_0, %c0_i32_1 : i32, i32, i32
  }
  func.func @transform_2(%arg0: i32, %arg1: i32) -> (i32, i32) {
    %c0_i32 = arith.constant 0 : i32
    %c0_i32_0 = arith.constant 0 : i32
    %c0_i32_1 = arith.constant 0 : i32
    return %c0_i32, %c0_i32_0 : i32, i32
  }
  func.func @transform_3(%arg0: i32, %arg1: i32) -> (i32, i32) {
    %c0_i32 = arith.constant 0 : i32
    %c0_i32_0 = arith.constant 0 : i32
    %c0_i32_1 = arith.constant 0 : i32
    return %c0_i32, %c0_i32_0 : i32, i32
  }
  func.func @transform_4(%arg0: i32, %arg1: i32) -> (i32, i32, i32) {
    %c0_i32 = arith.constant 0 : i32
    %c0_i32_0 = arith.constant 0 : i32
    %c0_i32_1 = arith.constant 0 : i32
    return %arg0, %c0_i32, %c0_i32_0 : i32, i32, i32
  }
}

</mosaic_0001>

<bundles_post_ra>
// kernel: tpu_custom_call.1
= control target key start
LH: loop header
LB: loop body
LE: loop exit
PB: predicated region body
PF: predicated region fallthrough
CT: control target
= control target key end

     0   :  { %9 = vsyncpa [#allocation4], 0  ;;  %s5451_s0 = inlined_call_operand.vmem [shape: bf16[2,11,11,12], index: 0, kind: input, shape index: {}]   ;;  %s5452_s1 = inlined_call_operand.vmem [shape: bf16[16,12,16], index: 1, kind: input, shape index: {}]   ;;  %s5453_s2 = inlined_call_operand.vmem [shape: f32[16,14], index: 2, kind: input, shape index: {}]   ;;  %s5454_s3 = inlined_call_operand.vmem [shape: f32[1,14], index: 3, kind: input, shape index: {}]   ;;  %s5455_s4 = inlined_call_operand.hbm [shape: f32[2,1,14], index: 4, kind: output, shape index: {}]  }
   0x1   :  { %11 = vsyncpa [#allocation4 + $0x1], 0  ;;  %s4776_s15 = smov 0   ;;  %s4778_s16 = smov 0  }
   0x2   :  { %s4780_s17 = smov 0   ;;  %s4782_s18 = smov 0  }
   0x3   :  { %s4784_s19 = smov 0   ;;  %s4786_s20 = smov 0  }
   0x4   :  { %s4788_s21 = smov 0   ;;  %s4790_s22 = smov 0  }
   0x5 LB: > { %s3572_s23 = sadd.s32 4294967295, %s4742_s22   ;;  %s3573_s24 = sadd.s32 4294967294, %s4742_s22   ;;  %s4742_s22 = sphi %s4790_s22, %s17_s22   ;;  %s4738_s21 = sphi %s4788_s21, %s5464_s21   ;;  %s4734_s20 = sphi %s4786_s20, %s5463_s20   ;;  %s4730_s19 = sphi %s4784_s19, %s5462_s19   ;;  %s4726_s18 = sphi %s4782_s18, %s5461_s18   ;;  %s4722_s17 = sphi %s4780_s17, %s5460_s17   ;;  %s4718_s16 = sphi %s4778_s16, %s5459_s16   ;;  %s4714_s15 = sphi %s4776_s15, %s5458_s15  }
   0x6   : > { %s26_s25 = sadd.s32 1, %s4734_s20  ;;  %s29_s26 = sadd.s32 1, %s4738_s21 }
   0x7   : > { %p27_p0 = scmp.ge.s32.totalorder %s26_s25, 2  ;;  %p135_p1 = scmp.ne.s32.totalorder %s4722_s17, %s4718_s16 }
   0x8   : > { %p136_p2 = scmp.eq.s32.totalorder %s3572_s23, 3  ;;  %p141_p4 = scmp.ne.s32.totalorder %s4718_s16, %s4714_s15 }
   0x9   : > { %s5466_s25 = smov (%p27_p0, %s26_s25), 0  ;;  %s5468_s26 = smov (!%p27_p0, %s29_s26), %s4738_s21 }
   0xa   : > { %p4825_p3 = por %p136_p2, %p135_p1  ;;  %p31_p5 = scmp.ge.s32.totalorder %s5468_s26, 2 }
   0xb   : > { %p142_p6 = scmp.eq.s32.totalorder %s3573_s24, 3  ;;  %p3576_p7 = scmp.ge.s32.totalorder %s4742_s22, 1 }
   0xc   : > { %p177_p8 = scmp.lt.s32.totalorder %s4742_s22, 5  ;;  %s5470_s26 = smov (%p31_p5, %s5468_s26), 0 }
   0xd   : > { %p4835_p9 = por %p142_p6, %p141_p4  ;;  %s122_s29 = ssub.s32 %s4738_s21, %s5470_s26 }
   0xe   : > { %p178_p10 = pnand %p3576_p7, %p177_p8  ;;  %s125_s30 = sadd.s32 1, %s4722_s17 }
   0xf   : > { %p123_p11 = scmp.eq.s32.totalorder %s122_s29, 0  ;;  %s200_s6 = sand.u32 (!%p178_p10), 1, %s4718_s16  }
  0x10   : > { %181 = sbr.rel (%p178_p10) target bundleno = 892 (0x37c), region = 36  ;;  %p202_p12 = scmp.lt.s32.totalorder (!%p178_p10), %s4730_s19, 1 }
  0x11   : > { %s4843_s5 = scalar_select %p123_p11, %s4722_s17, %s125_s30  }
  0x12   : > { %s4853_s12 = scalar_lea.vmem (!%p178_p10), [#allocation3], %s200_s6  ;;  %p3578_p13 = scmp.ne.s32.totalorder (!%p178_p10), %s4726_s18, 0 }
  0x17   : > { %s203_s7 = scalar_select %p202_p12, %s4730_s19, 1 }
  0x18   : > { %211 = sbr.rel (%p3578_p13) target bundleno = 31 (0x1f), region = 40  ;;  %vm212_vm0 = vcmask (!%p3578_p13), 122880   ;;  %v4744_v0 = vmov (!%p3578_p13), 0.0  }
  0x19   : > { %s4533_s8 = smul.u32 88, %s203_s7  ;;  %213 = vst.msk [vmem:[#allocation2] sm:$0x1] (!%p3578_p13), %vm212_vm0, %v4744_v0 }
  0x1b   : > { %s206_s11 = scalar_lea.vmem %s5451_s0, %s4533_s8 }
  0x1f PF: > { %vm246_vm1 = vcmask 1045504   ;;  %v4745_v1 = vmov 0.0   ;;  %v4611_v2 = vld [vmem:[%s5452_s1 + $0x8] sm:$0x3f]   ;;  %s3761_s23 = sshll.u32 %s4726_s18, 5  ;;  %vm4746_vm2 = vmmov 0  }
  0x20   : > { %3899 = vmatprep.subr.bf16.mxu0 %v4745_v1  ;;  %3995 = vmatprep.subr.bf16.mxu1 %v4745_v1  ;;  %s4866_s24 = scalar_lea.vmem %s206_s11, %s3761_s23  ;;  %v4869_v3 = vsel %vm246_vm1, %v4611_v2, 0  ;;  %v4613_v12 = vld [vmem:[%s5452_s1] sm:$0x3f]   ;;  %vm242_vm3 = vcmask 97280   ;;  %v4615_v20 = vld [vmem:[%s5452_s1 + $0x10] sm:$0x3f]  }
  0x21   : > { %3901 = vmatprep.mubr.msk.bf16.mxu0 %vm4746_vm2, %v4745_v1  ;;  %3997 = vmatprep.mubr.msk.bf16.mxu1 %vm4746_vm2, %v4745_v1  ;;  %v218_v4 = vld [vmem:[%s4866_s24] sm:$0xf]  ;;  %v221_v5 = vld [vmem:[%s4866_s24 + $0x4] sm:$0x1]  ;;  %v3606_v7 = vld [vmem:[%s4866_s24 + $0x8] sm:$0xf] }
  0x22   : > { %3900 = vmatpush3.bf16.msra.mxu0 %v4869_v3  ;;  %3996 = vmatpush3.bf16.msra.mxu1 %v4869_v3  ;;  %v3584_v6 = vcombine.low %v218_v4, %v221_v5  ;;  %v3607_v8 = vld [vmem:[%s4866_s24 + $0xc] sm:$0x1]  ;;  %v4883_v18 = vsel %vm246_vm1, %v4613_v12, 0  ;;  %v4902_v21 = vsel %vm246_vm1, %v4615_v20, 0  ;;  %v3601_v22 = vld [vmem:[%s4866_s24 + $0x8] sm:$0xf] }
  0x23   : > { %3905 = vmatprep.subr.bf16.mxu0 %v4745_v1  ;;  %v3610_v9 = vcombine.low %v3606_v7, %v3607_v8  ;;  %4001 = vmatprep.subr.bf16.mxu1 %v4745_v1  ;;  %v341_v23 = vld [vmem:[%s4866_s24] sm:$0xe]  ;;  %v3613_v24 = vld [vmem:[%s4866_s24 + $0x8] sm:$0xe]  ;;  %v401_v26 = vld [vmem:[%s4866_s24 + $0x4] sm:$0x3] }
  0x24   : > { %v231_v10 = vshrl.u32 %v3584_v6, 16  ;;  %v233_v11 = vshll.u32 %v3584_v6, 16  ;;  %v3591_v25 = vcombine.low %v341_v23, %v221_v5  ;;  %v3616_v27 = vcombine.low %v3613_v24, %v3607_v8  ;;  %v4618_v28 = vld [vmem:[%s5452_s1 + $0x18] sm:$0x3f]   ;;  %v3619_v29 = vld [vmem:[%s4866_s24 + $0xc] sm:$0x3] }
  0x25   : > { %v539_v13 = vshrl.u32 %v3610_v9, 16  ;;  %v541_v14 = vshll.u32 %v3610_v9, 16  ;;  %v3596_v31 = vcombine.low %v341_v23, %v401_v26  ;;  %v3622_v33 = vcombine.low %v3613_v24, %v3619_v29  ;;  %v4621_v43 = vld [vmem:[%s5452_s1 + $0x20] sm:$0x3f]   ;;  %v4622_v47 = vld [vmem:[%s5452_s1 + $0x28] sm:$0x3f]  }
  0x26   : > { %v235_v15 = vrot.slane %v233_v11, 1  ;;  %v348_v30 = vrot.slane %v3591_v25, 1  ;;  %v4922_v32 = vrot.slane %v3616_v27, 1  ;;  %v4925_v34 = vsel %vm246_vm1, %v4618_v28, 0  ;;  %v3632_v48 = vld [vmem:[%s4866_s24 + $0x10] sm:$0xf] }
  0x27   : > { %v543_v16 = vrot.slane %v541_v14, 1  ;;  %v409_v35 = vshrl.u32 %v3596_v31, 16  ;;  %v412_v36 = vshll.u32 %v3596_v31, 16  ;;  %v665_v37 = vshrl.u32 %v3622_v33, 16  ;;  %v3633_v49 = vld [vmem:[%s4866_s24 + $0x14] sm:$0x1] }
  0x28   : > { %v236_v17 = vor.u32 %v235_v15, %v231_v10  ;;  %v668_v38 = vshll.u32 %v3622_v33, 16  ;;  %v4942_v46 = vsel %vm246_vm1, %v4621_v43, 0  ;;  %v3636_v50 = vcombine.low %v3632_v48, %v3633_v49  ;;  %v4963_v52 = vld [vmem:[%s4866_s24 + $0x10] sm:$0xf]  ;;  %v4625_v61 = vld [vmem:[%s5452_s1 + $0x38] sm:$0x3f]  }
  0x29   : > { %v4885_v19 = vor.u32 %v543_v16, %v539_v13  ;;  %v411_v39 = vrot.slane %v409_v35, 1  ;;  %v414_v40 = vrot.slane %v412_v36, 2  ;;  %v667_v41 = vrot.slane %v665_v37, 1  ;;  %v4623_v56 = vld [vmem:[%s5452_s1 + $0x30] sm:$0x3f]   ;;  %p3755_p0 = scmp.ne.s32.totalorder %s4726_s18, 1 }
  0x2a   : > { %3902 = vmatmul.mubr.msk.bf16.vlgmr.msra.gmra.mrb[0].mxu0 %vm242_vm3, %v236_v17  ;;  %v670_v42 = vrot.slane %v668_v38, 2  ;;  %v4960_v51 = vsel %vm246_vm1, %v4622_v47, 0  ;;  %v797_v53 = vshll.u32 %v3636_v50, 16  ;;  %v795_v54 = vshrl.u32 %v3636_v50, 16  ;;  %v3639_v59 = vld [vmem:[%s4866_s24 + $0x10] sm:$0xe] }
  0x2b   : > { %3906 = vmatpush3.bf16.msra.mxu0 %v4883_v18  ;;  %3998 = vmatmul.mubr.msk.bf16.vlgmr.msra.gmra.mrb[0].mxu1 %vm242_vm3, %v4885_v19  ;;  %v415_v44 = vor.u32 %v414_v40, %v411_v39  ;;  %v4982_v58 = vsel %vm246_vm1, %v4623_v56, 0  ;;  %v3642_v60 = vcombine.low %v3639_v59, %v3633_v49  ;;  %v3645_v62 = vld [vmem:[%s4866_s24 + $0x14] sm:$0x3]  ;;  %v5004_v2 = vsel %vm246_vm1, %v4625_v61, 0  ;;  %v4628_v8 = vld [vmem:[%s5452_s1 + $0x40] sm:$0x3f]  }
  0x2c   : > { %4002 = vmatpush3.bf16.msra.mxu1 %v4883_v18  ;;  %3907 = vmatprep.mubr.msk.bf16.mxu0 %vm4746_vm2, %v4745_v1  ;;  %v671_v45 = vor.u32 %v670_v42, %v667_v41  ;;  %v799_v55 = vrot.slane %v797_v53, 1  ;;  %v3648_v0 = vcombine.low %v3639_v59, %v3645_v62  ;;  %v5024_v10 = vsel %vm246_vm1, %v4628_v8, 0  ;;  %v4629_v11 = vld [vmem:[%s5452_s1 + $0x48] sm:$0x3f]   ;;  %v3658_v12 = vld [vmem:[%s4866_s24 + $0x18] sm:$0xf] }
  0x2d   : > { %3911 = vmatprep.subr.bf16.mxu0 %v4745_v1  ;;  %4003 = vmatprep.mubr.msk.bf16.mxu1 %vm4746_vm2, %v4745_v1  ;;  %v5001_v63 = vrot.slane %v3642_v60, 1  ;;  %v3659_v13 = vld [vmem:[%s4866_s24 + $0x1c] sm:$0x1]  ;;  %v5043_v15 = vsel %vm246_vm1, %v4629_v11, 0  ;;  %v5046_v16 = vld [vmem:[%s4866_s24 + $0x18] sm:$0xf] }
  0x2e   : > { %4007 = vmatprep.subr.bf16.mxu1 %v4745_v1  ;;  %v4979_v57 = vor.u32 %v799_v55, %v795_v54  ;;  %v924_v5 = vshll.u32 %v3648_v0, 16  ;;  %v3662_v14 = vcombine.low %v3658_v12, %v3659_v13  ;;  %v3665_v25 = vld [vmem:[%s4866_s24 + $0x18] sm:$0xe]  ;;  %v3671_v28 = vld [vmem:[%s4866_s24 + $0x1c] sm:$0x3]  ;;  %vm1237_vm4 = vcmask 130048  }
  0x2f   : > { %v3668_v26 = vcombine.low %v3665_v25, %v3659_v13  ;;  %v4632_v27 = vld [vmem:[%s5452_s1 + $0x58] sm:$0x3f]   ;;  %v4635_v37 = vld [vmem:[%s5452_s1 + $0x60] sm:$0x3f]   ;;  %v4636_v40 = vld [vmem:[%s5452_s1 + $0x68] sm:$0x3f]  }
  0x30   : > { %v926_v7 = vrot.slane %v924_v5, 2  ;;  %v1053_v17 = vshll.u32 %v3662_v14, 16  ;;  %v5088_v31 = vsel %vm246_vm1, %v4632_v27, 0  ;;  %v5108_v39 = vsel %vm246_vm1, %v4635_v37, 0  ;;  %v3693_v41 = vld [vmem:[%s4866_s24 + $0x20] sm:$0xf] }
  0x31   : > { %v5085_v29 = vrot.slane %v3668_v26, 1  ;;  %v3694_v42 = vld [vmem:[%s4866_s24 + $0x24] sm:$0x1]  ;;  %v4637_v50 = vld [vmem:[%s5452_s1 + $0x70] sm:$0x3f]   ;;  %vm3381_vm5 = vcmask 122880  }
  0x32   : > { %v1055_v20 = vrot.slane %v1053_v17, 1  ;;  %v3695_v43 = vcombine.low %v3693_v41, %v3694_v42  ;;  %v5151_v54 = vsel %vm246_vm1, %v4637_v50, 0  ;;  %v3697_v55 = vld [vmem:[%s4866_s24 + $0x20] sm:$0xe]  ;;  %v4639_v59 = vld [vmem:[%s5452_s1 + $0x78] sm:$0x3f]  }
  0x33   : > { %v3698_v56 = vcombine.low %v3697_v55, %v3694_v42  ;;  %v3700_v60 = vld [vmem:[%s4866_s24 + $0x24] sm:$0x3]  ;;  %v3746_v17 = vld [vmem:[%s4866_s24 + $0x34] sm:$0x1]  ;;  %v3749_v26 = vld [vmem:[%s4866_s24 + $0x30] sm:$0xe] }
  0x34   : > { %v1795_v47 = vshll.u32 %v3695_v43, 16  ;;  %v1793_v48 = vshrl.u32 %v3695_v43, 16  ;;  %v3701_v62 = vcombine.low %v3697_v55, %v3700_v60  ;;  %v3750_v27 = vcombine.low %v3749_v26, %v3746_v17 }
  0x35   : > { %v5170_v61 = vrot.slane %v3698_v56, 1  ;;  %vm4748_vm6 = vmmov (!%p3755_p0), 0   ;;  %vm3465_vm7 = vcmask (!%p3755_p0), 106496  }
  0x36   : > { %3908 = vmatmul.mubr.msk.bf16.vlgmr.msra.gmra.mrb[0].mxu0 %vm242_vm3, %v218_v4  ;;  %v921_v4 = vshrl.u32 %v3648_v0, 16  ;;  %v1797_v49 = vrot.slane %v1795_v47, 1  ;;  %v5173_v0 = vsel %vm246_vm1, %v4639_v59, 0  ;;  %v1900_v5 = vshll.u32 %v3701_v62, 16 }
  0x37   : > { %3912 = vmatpush3.bf16.msra.mxu0 %v4902_v21  ;;  %4004 = vmatmul.mubr.msk.bf16.vlgmr.msra.gmra.mrb[0].mxu1 %vm242_vm3, %v3601_v22 }
  0x38   : > { %4008 = vmatpush3.bf16.msra.mxu1 %v4902_v21  ;;  %3913 = vmatprep.mubr.msk.bf16.mxu0 %vm4746_vm2, %v4745_v1  ;;  %v923_v6 = vrot.slane %v921_v4, 1  ;;  %v5148_v53 = vor.u32 %v1797_v49, %v1793_v48  ;;  %v1897_v4 = vshrl.u32 %v3701_v62, 16 }
  0x39   : > { %3917 = vmatprep.subr.bf16.mxu0 %v4745_v1  ;;  %4009 = vmatprep.mubr.msk.bf16.mxu1 %vm4746_vm2, %v4745_v1 }
  0x3a   : > { %4013 = vmatprep.subr.bf16.mxu1 %v4745_v1  ;;  %v5021_v9 = vor.u32 %v926_v7, %v923_v6  ;;  %v1899_v6 = vrot.slane %v1897_v4, 1  ;;  %v1902_v7 = vrot.slane %v1900_v5, 2 }
  0x3c   : > { %v5187_v8 = vor.u32 %v1902_v7, %v1899_v6 }
  0x42   : > { %3914 = vmatmul.mubr.msk.bf16.vlgmr.msra.gmra.mrb[0].mxu0 %vm242_vm3, %v348_v30  ;;  %v3674_v30 = vcombine.low %v3665_v25, %v3671_v28  ;;  %v3752_v28 = vld [vmem:[%s4866_s24 + $0x34] sm:$0x3] }
  0x43   : > { %3918 = vmatpush3.bf16.msra.mxu0 %v4925_v34  ;;  %4010 = vmatmul.mubr.msk.bf16.vlgmr.msra.gmra.mrb[0].mxu1 %vm242_vm3, %v4922_v32 }
  0x44   : > { %4014 = vmatpush3.bf16.msra.mxu1 %v4925_v34  ;;  %3919 = vmatprep.mubr.msk.bf16.mxu0 %vm4746_vm2, %v4745_v1  ;;  %v1180_v33 = vshll.u32 %v3674_v30, 16 }
  0x45   : > { %3923 = vmatprep.subr.bf16.mxu0 %v4745_v1  ;;  %4015 = vmatprep.mubr.msk.bf16.mxu1 %vm4746_vm2, %v4745_v1 }
  0x46   : > { %4019 = vmatprep.subr.bf16.mxu1 %v4745_v1  ;;  %v1182_v36 = vrot.slane %v1180_v33, 2 }
  0x4e   : > { %3920 = vmatmul.mubr.msk.bf16.vlgmr.msra.gmra.mrb[0].mxu0 %vm242_vm3, %v415_v44  ;;  %v5128_v44 = vsel %vm246_vm1, %v4636_v40, 0 }
  0x4f   : > { %3924 = vmatpush3.bf16.msra.mxu0 %v4942_v46  ;;  %4016 = vmatmul.mubr.msk.bf16.vlgmr.msra.gmra.mrb[0].mxu1 %vm242_vm3, %v671_v45 }
  0x50   : > { %4020 = vmatpush3.bf16.msra.mxu1 %v4942_v46  ;;  %3925 = vmatprep.mubr.msk.bf16.mxu0 %vm4746_vm2, %v4745_v1 }
  0x51   : > { %3929 = vmatprep.subr.bf16.mxu0 %v4745_v1  ;;  %4021 = vmatprep.mubr.msk.bf16.mxu1 %vm4746_vm2, %v4745_v1 }
  0x52   : > { %4025 = vmatprep.subr.bf16.mxu1 %v4745_v1 }
  0x5a   : > { %3926 = vmatmul.mubr.msk.bf16.vlgmr.msra.gmra.mrb[0].mxu0 %vm242_vm3, %v3601_v22  ;;  %v4630_v22 = vld [vmem:[%s5452_s1 + $0x50] sm:$0x3f]  }
  0x5b   : > { %3930 = vmatpush3.bf16.msra.mxu0 %v4960_v51  ;;  %4022 = vmatmul.mubr.msk.bf16.vlgmr.msra.gmra.mrb[0].mxu1 %vm242_vm3, %v4963_v52  ;;  %v5066_v24 = vsel %vm246_vm1, %v4630_v22, 0 }
  0x5c   : > { %4026 = vmatpush3.bf16.msra.mxu1 %v4960_v51  ;;  %3931 = vmatprep.mubr.msk.bf16.mxu0 %vm4746_vm2, %v4745_v1 }
  0x5d   : > { %3935 = vmatprep.subr.bf16.mxu0 %v4745_v1  ;;  %4027 = vmatprep.mubr.msk.bf16.mxu1 %vm4746_vm2, %v4745_v1 }
  0x5e   : > { %4031 = vmatprep.subr.bf16.mxu1 %v4745_v1 }
  0x66   : > { %3932 = vmatmul.mubr.msk.bf16.vlgmr.msra.gmra.mrb[0].mxu0 %vm242_vm3, %v4885_v19  ;;  %v1051_v19 = vshrl.u32 %v3662_v14, 16 }
  0x67   : > { %3936 = vmatpush3.bf16.msra.mxu0 %v4982_v58  ;;  %4028 = vmatmul.mubr.msk.bf16.vlgmr.msra.gmra.mrb[0].mxu1 %vm242_vm3, %v4979_v57 }
  0x68   : > { %4032 = vmatpush3.bf16.msra.mxu1 %v4982_v58  ;;  %3937 = vmatprep.mubr.msk.bf16.mxu0 %vm4746_vm2, %v4745_v1  ;;  %v5063_v23 = vor.u32 %v1055_v20, %v1051_v19  ;;  %v3743_v20 = vld [vmem:[%s4866_s24 + $0x30] sm:$0xf] }
  0x69   : > { %3941 = vmatprep.subr.bf16.mxu0 %v4745_v1  ;;  %4033 = vmatprep.mubr.msk.bf16.mxu1 %vm4746_vm2, %v4745_v1 }
  0x6a   : > { %4037 = vmatprep.subr.bf16.mxu1 %v4745_v1 }
  0x72   : > { %3938 = vmatmul.mubr.msk.bf16.vlgmr.msra.gmra.mrb[0].mxu0 %vm242_vm3, %v4922_v32  ;;  %v1177_v32 = vshrl.u32 %v3674_v30, 16  ;;  %v3753_v30 = vcombine.low %v3749_v26, %v3752_v28  ;;  %v3390_v26 = vld [vmem:[%s5453_s2 + $0x8] sm:$0xff] (!%p3755_p0) }
  0x73   : > { %3942 = vmatpush3.bf16.msra.mxu0 %v5004_v2  ;;  %4034 = vmatmul.mubr.msk.bf16.vlgmr.msra.gmra.mrb[0].mxu1 %vm242_vm3, %v5001_v63 }
  0x74   : > { %4038 = vmatpush3.bf16.msra.mxu1 %v5004_v2  ;;  %3943 = vmatprep.mubr.msk.bf16.mxu0 %vm4746_vm2, %v4745_v1  ;;  %v1179_v35 = vrot.slane %v1177_v32, 1  ;;  %v3322_v32 = vshll.u32 %v3753_v30, 16 }
  0x75   : > { %3947 = vmatprep.subr.bf16.mxu0 %v4745_v1  ;;  %4039 = vmatprep.mubr.msk.bf16.mxu1 %vm4746_vm2, %v4745_v1 }
  0x76   : > { %4043 = vmatprep.subr.bf16.mxu1 %v4745_v1  ;;  %v5105_v38 = vor.u32 %v1182_v36, %v1179_v35  ;;  %v3324_v35 = vrot.slane %v3322_v32, 2  ;;  %v3391_v32 = vld [vmem:[%s5454_s3] sm:$0x1] (!%p3755_p0) }
  0x7e   : > { %3944 = vmatmul.mubr.msk.bf16.vlgmr.msra.gmra.mrb[0].mxu0 %vm242_vm3, %v671_v45  ;;  %v5131_v45 = vld [vmem:[%s4866_s24 + $0x20] sm:$0xf] }
  0x7f   : > { %3948 = vmatpush3.bf16.msra.mxu0 %v5024_v10  ;;  %4040 = vmatmul.mubr.msk.bf16.vlgmr.msra.gmra.mrb[0].mxu1 %vm242_vm3, %v5021_v9 }
  0x80   : > { %4044 = vmatpush3.bf16.msra.mxu1 %v5024_v10  ;;  %3949 = vmatprep.mubr.msk.bf16.mxu0 %vm4746_vm2, %v4745_v1 }
  0x81   : > { %3953 = vmatprep.subr.bf16.mxu0 %v4745_v1  ;;  %4045 = vmatprep.mubr.msk.bf16.mxu1 %vm4746_vm2, %v4745_v1 }
  0x82   : > { %4049 = vmatprep.subr.bf16.mxu1 %v4745_v1 }
  0x8a   : > { %3950 = vmatmul.mubr.msk.bf16.vlgmr.msra.gmra.mrb[0].mxu0 %vm242_vm3, %v4963_v52 }
  0x8b   : > { %3954 = vmatpush3.bf16.msra.mxu0 %v5043_v15  ;;  %4046 = vmatmul.mubr.msk.bf16.vlgmr.msra.gmra.mrb[0].mxu1 %vm242_vm3, %v5046_v16 }
  0x8c   : > { %4050 = vmatpush3.bf16.msra.mxu1 %v5043_v15  ;;  %3955 = vmatprep.mubr.msk.bf16.mxu0 %vm4746_vm2, %v4745_v1 }
  0x8d   : > { %3959 = vmatprep.subr.bf16.mxu0 %v4745_v1  ;;  %4051 = vmatprep.mubr.msk.bf16.mxu1 %vm4746_vm2, %v4745_v1 }
  0x8e   : > { %4055 = vmatprep.subr.bf16.mxu1 %v4745_v1 }
  0x96   : > { %3956 = vmatmul.mubr.msk.bf16.vlgmr.msra.gmra.mrb[0].mxu0 %vm242_vm3, %v4979_v57 }
  0x97   : > { %3960 = vmatpush3.bf16.msra.mxu0 %v5066_v24  ;;  %4052 = vmatmul.mubr.msk.bf16.vlgmr.msra.gmra.mrb[0].mxu1 %vm242_vm3, %v5063_v23 }
  0x98   : > { %4056 = vmatpush3.bf16.msra.mxu1 %v5066_v24  ;;  %3961 = vmatprep.mubr.msk.bf16.mxu0 %vm4746_vm2, %v4745_v1 }
  0x99   : > { %3965 = vmatprep.subr.bf16.mxu0 %v4745_v1  ;;  %4057 = vmatprep.mubr.msk.bf16.mxu1 %vm4746_vm2, %v4745_v1 }
  0x9a   : > { %4061 = vmatprep.subr.bf16.mxu1 %v4745_v1 }
  0xa2   : > { %3962 = vmatmul.mubr.msk.bf16.vlgmr.msra.gmra.mrb[0].mxu0 %vm242_vm3, %v5001_v63 }
  0xa3   : > { %3966 = vmatpush3.bf16.msra.mxu0 %v5088_v31  ;;  %4058 = vmatmul.mubr.msk.bf16.vlgmr.msra.gmra.mrb[0].mxu1 %vm242_vm3, %v5085_v29 }
  0xa4   : > { %4062 = vmatpush3.bf16.msra.mxu1 %v5088_v31  ;;  %3967 = vmatprep.mubr.msk.bf16.mxu0 %vm4746_vm2, %v4745_v1 }
  0xa5   : > { %3971 = vmatprep.subr.bf16.mxu0 %v4745_v1  ;;  %4063 = vmatprep.mubr.msk.bf16.mxu1 %vm4746_vm2, %v4745_v1 }
  0xa6   : > { %4067 = vmatprep.subr.bf16.mxu1 %v4745_v1 }
  0xae   : > { %3968 = vmatmul.mubr.msk.bf16.vlgmr.msra.gmra.mrb[0].mxu0 %vm242_vm3, %v5021_v9 }
  0xaf   : > { %3972 = vmatpush3.bf16.msra.mxu0 %v5108_v39  ;;  %4064 = vmatmul.mubr.msk.bf16.vlgmr.msra.gmra.mrb[0].mxu1 %vm242_vm3, %v5105_v38 }
  0xb0   : > { %4068 = vmatpush3.bf16.msra.mxu1 %v5108_v39  ;;  %3973 = vmatprep.mubr.msk.bf16.mxu0 %vm4746_vm2, %v4745_v1 }
  0xb1   : > { %3977 = vmatprep.subr.bf16.mxu0 %v4745_v1  ;;  %4069 = vmatprep.mubr.msk.bf16.mxu1 %vm4746_vm2, %v4745_v1 }
  0xb2   : > { %4073 = vmatprep.subr.bf16.mxu1 %v4745_v1 }
  0xba   : > { %3974 = vmatmul.mubr.msk.bf16.vlgmr.msra.gmra.mrb[0].mxu0 %vm242_vm3, %v5046_v16 }
  0xbb   : > { %3978 = vmatpush3.bf16.msra.mxu0 %v5128_v44  ;;  %4070 = vmatmul.mubr.msk.bf16.vlgmr.msra.gmra.mrb[0].mxu1 %vm242_vm3, %v5131_v45 }
  0xbc   : > { %4074 = vmatpush3.bf16.msra.mxu1 %v5128_v44  ;;  %3979 = vmatprep.mubr.msk.bf16.mxu0 %vm4746_vm2, %v4745_v1 }
  0xbd   : > { %3983 = vmatprep.subr.bf16.mxu0 %v4745_v1  ;;  %4075 = vmatprep.mubr.msk.bf16.mxu1 %vm4746_vm2, %v4745_v1 }
  0xbe   : > { %4079 = vmatprep.subr.bf16.mxu1 %v4745_v1 }
  0xc6   : > { %3980 = vmatmul.mubr.msk.bf16.vlgmr.msra.gmra.mrb[0].mxu0 %vm242_vm3, %v5063_v23 }
  0xc7   : > { %3984 = vmatpush3.bf16.msra.mxu0 %v5151_v54  ;;  %4076 = vmatmul.mubr.msk.bf16.vlgmr.msra.gmra.mrb[0].mxu1 %vm242_vm3, %v5148_v53 }
  0xc8   : > { %4080 = vmatpush3.bf16.msra.mxu1 %v5151_v54  ;;  %3985 = vmatprep.mubr.msk.bf16.mxu0 %vm4746_vm2, %v4745_v1 }
  0xc9   : > { %3989 = vmatprep.subr.bf16.mxu0 %v4745_v1  ;;  %4081 = vmatprep.mubr.msk.bf16.mxu1 %vm4746_vm2, %v4745_v1 }
  0xca   : > { %4085 = vmatprep.subr.bf16.mxu1 %v4745_v1 }
  0xd2   : > { %3986 = vmatmul.mubr.msk.bf16.vlgmr.msra.gmra.mrb[0].mxu0 %vm242_vm3, %v5085_v29 }
  0xd3   : > { %3990 = vmatpush3.bf16.msra.mxu0 %v5173_v0  ;;  %4082 = vmatmul.mubr.msk.bf16.vlgmr.msra.gmra.mrb[0].mxu1 %vm242_vm3, %v5170_v61 }
  0xd4   : > { %4086 = vmatpush3.bf16.msra.mxu1 %v5173_v0  ;;  %3991 = vmatprep.mubr.msk.bf16.mxu0 %vm4746_vm2, %v4745_v1 }
  0xd5   : > { %4087 = vmatprep.mubr.msk.bf16.mxu1 %vm4746_vm2, %v4745_v1  ;;  %4091 = vmatprep.subr.bf16.mxu0 %v4745_v1 }
  0xd6   : > { %4187 = vmatprep.subr.bf16.mxu1 %v4745_v1 }
  0xde   : > { %3992 = vmatmul.mubr.msk.bf16.vlgmr.msra.gmra.mrb[0].mxu0 %vm242_vm3, %v5105_v38 }
  0xdf   : > { %4088 = vmatmul.mubr.msk.bf16.vlgmr.msra.gmra.mrb[0].mxu1 %vm242_vm3, %v5187_v8  ;;  %4092 = vmatpush3.bf16.msra.mxu0 %v4869_v3 }
  0xe0   : > { %4188 = vmatpush3.bf16.msra.mxu1 %v4869_v3  ;;  %4093 = vmatprep.mubr.msk.bf16.mxu0 %vm4746_vm2, %v4745_v1  ;;  %v3719_v3 = vld [vmem:[%s4866_s24 + $0x28] sm:$0xf] }
  0xe1   : > { %4097 = vmatprep.subr.bf16.mxu0 %v4745_v1  ;;  %4189 = vmatprep.mubr.msk.bf16.mxu1 %vm4746_vm2, %v4745_v1 }
  0xe2   : > { %4193 = vmatprep.subr.bf16.mxu1 %v4745_v1 }
  0xe6   : > { %4094 = vmatmul.mubr.msk.bf16.vlgmr.msra.gmra.mrb[4].mxu0 %vm242_vm3, %v4979_v57 }
  0xe7   : > { %4098 = vmatpush3.bf16.msra.mxu0 %v4883_v18  ;;  %4190 = vmatmul.mubr.msk.bf16.vlgmr.msra.gmra.mrb[4].mxu1 %vm242_vm3, %v5063_v23 }
  0xe8   : > { %4194 = vmatpush3.bf16.msra.mxu1 %v4883_v18  ;;  %4099 = vmatprep.mubr.msk.bf16.mxu0 %vm4746_vm2, %v4745_v1  ;;  %v3720_v18 = vld [vmem:[%s4866_s24 + $0x2c] sm:$0x1] }
  0xe9   : > { %4103 = vmatprep.subr.bf16.mxu0 %v4745_v1  ;;  %4195 = vmatprep.mubr.msk.bf16.mxu1 %vm4746_vm2, %v4745_v1 }
  0xea   : > { %4199 = vmatprep.subr.bf16.mxu1 %v4745_v1 }
  0xf2   : > { %4100 = vmatmul.mubr.msk.bf16.vlgmr.msra.gmra.mrb[4].mxu0 %vm242_vm3, %v4963_v52 }
  0xf3   : > { %4104 = vmatpush3.bf16.msra.mxu0 %v4902_v21  ;;  %4196 = vmatmul.mubr.msk.bf16.vlgmr.msra.gmra.mrb[4].mxu1 %vm242_vm3, %v5046_v16 }
  0xf4   : > { %4200 = vmatpush3.bf16.msra.mxu1 %v4902_v21  ;;  %4105 = vmatprep.mubr.msk.bf16.mxu0 %vm4746_vm2, %v4745_v1  ;;  %v3721_v21 = vcombine.low %v3719_v3, %v3720_v18 }
  0xf5   : > { %4109 = vmatprep.subr.bf16.mxu0 %v4745_v1  ;;  %4201 = vmatprep.mubr.msk.bf16.mxu1 %vm4746_vm2, %v4745_v1 }
  0xf6   : > { %4205 = vmatprep.subr.bf16.mxu1 %v4745_v1 }
  0xfe   : > { %4106 = vmatmul.mubr.msk.bf16.vlgmr.msra.gmra.mrb[4].mxu0 %vm242_vm3, %v5001_v63 }
  0xff   : > { %4110 = vmatpush3.bf16.msra.mxu0 %v4925_v34  ;;  %4202 = vmatmul.mubr.msk.bf16.vlgmr.msra.gmra.mrb[4].mxu1 %vm242_vm3, %v5085_v29 }
 0x100   : > { %4206 = vmatpush3.bf16.msra.mxu1 %v4925_v34  ;;  %4111 = vmatprep.mubr.msk.bf16.mxu0 %vm4746_vm2, %v4745_v1  ;;  %v3717_v34 = vld [vmem:[%s4866_s24 + $0x28] sm:$0xf] }
 0x101   : > { %4115 = vmatprep.subr.bf16.mxu0 %v4745_v1  ;;  %4207 = vmatprep.mubr.msk.bf16.mxu1 %vm4746_vm2, %v4745_v1 }
 0x102   : > { %4211 = vmatprep.subr.bf16.mxu1 %v4745_v1 }
 0x10a   : > { %4112 = vmatmul.mubr.msk.bf16.vlgmr.msra.gmra.mrb[4].mxu0 %vm242_vm3, %v5021_v9 }
 0x10b   : > { %4116 = vmatpush3.bf16.msra.mxu0 %v4942_v46  ;;  %4208 = vmatmul.mubr.msk.bf16.vlgmr.msra.gmra.mrb[4].mxu1 %vm242_vm3, %v5105_v38 }
 0x10c   : > { %4212 = vmatpush3.bf16.msra.mxu1 %v4942_v46  ;;  %4117 = vmatprep.mubr.msk.bf16.mxu0 %vm4746_vm2, %v4745_v1  ;;  %v2506_v46 = vshll.u32 %v3721_v21, 16 }
 0x10d   : > { %4121 = vmatprep.subr.bf16.mxu0 %v4745_v1  ;;  %4213 = vmatprep.mubr.msk.bf16.mxu1 %vm4746_vm2, %v4745_v1 }
 0x10e   : > { %4217 = vmatprep.subr.bf16.mxu1 %v4745_v1  ;;  %v2508_v52 = vrot.slane %v2506_v46, 1 }
 0x116   : > { %4118 = vmatmul.mubr.msk.bf16.vlgmr.msra.gmra.mrb[4].mxu0 %vm242_vm3, %v5046_v16  ;;  %v3745_v16 = vld [vmem:[%s4866_s24 + $0x30] sm:$0xf] }
 0x117   : > { %4122 = vmatpush3.bf16.msra.mxu0 %v4960_v51  ;;  %4214 = vmatmul.mubr.msk.bf16.vlgmr.msra.gmra.mrb[4].mxu1 %vm242_vm3, %v5131_v45  ;;  %v3747_v19 = vcombine.low %v3745_v16, %v3746_v17 }
 0x118   : > { %4218 = vmatpush3.bf16.msra.mxu1 %v4960_v51  ;;  %4123 = vmatprep.mubr.msk.bf16.mxu0 %vm4746_vm2, %v4745_v1  ;;  %v2504_v51 = vshrl.u32 %v3721_v21, 16 }
 0x119   : > { %4127 = vmatprep.subr.bf16.mxu0 %v4745_v1  ;;  %4219 = vmatprep.mubr.msk.bf16.mxu1 %vm4746_vm2, %v4745_v1  ;;  %v3217_v22 = vshll.u32 %v3747_v19, 16 }
 0x11a   : > { %4223 = vmatprep.subr.bf16.mxu1 %v4745_v1  ;;  %v2509_v57 = vor.u32 %v2508_v52, %v2504_v51 }
 0x122   : > { %4124 = vmatmul.mubr.msk.bf16.vlgmr.msra.gmra.mrb[4].mxu0 %vm242_vm3, %v5063_v23  ;;  %v3215_v23 = vshrl.u32 %v3747_v19, 16 }
 0x123   : > { %4128 = vmatpush3.bf16.msra.mxu0 %v4982_v58  ;;  %4220 = vmatmul.mubr.msk.bf16.vlgmr.msra.gmra.mrb[4].mxu1 %vm242_vm3, %v5148_v53 }
 0x124   : > { %4224 = vmatpush3.bf16.msra.mxu1 %v4982_v58  ;;  %4129 = vmatprep.mubr.msk.bf16.mxu0 %vm4746_vm2, %v4745_v1  ;;  %v3723_v58 = vld [vmem:[%s4866_s24 + $0x28] sm:$0xe] }
 0x125   : > { %4133 = vmatprep.subr.bf16.mxu0 %v4745_v1  ;;  %4225 = vmatprep.mubr.msk.bf16.mxu1 %vm4746_vm2, %v4745_v1  ;;  %v3724_v63 = vcombine.low %v3723_v58, %v3720_v18 }
 0x126   : > { %4229 = vmatprep.subr.bf16.mxu1 %v4745_v1 }
 0x127   : > { %v2558_v9 = vrot.slane %v3724_v63, 1 }
 0x12e   : > { %4130 = vmatmul.mubr.msk.bf16.vlgmr.msra.gmra.mrb[4].mxu0 %vm242_vm3, %v5085_v29  ;;  %v3269_v29 = vrot.slane %v3750_v27, 1  ;;  %v4747_v27 = vmov (!%p3755_p0), 0.0|0.0  }
 0x12f   : > { %4134 = vmatpush3.bf16.msra.mxu0 %v5004_v2  ;;  %4226 = vmatmul.mubr.msk.bf16.vlgmr.msra.gmra.mrb[4].mxu1 %vm242_vm3, %v5170_v61 }
 0x130   : > { %4230 = vmatpush3.bf16.msra.mxu1 %v5004_v2  ;;  %4135 = vmatprep.mubr.msk.bf16.mxu0 %vm4746_vm2, %v4745_v1  ;;  %v3726_v2 = vld [vmem:[%s4866_s24 + $0x2c] sm:$0x3] }
 0x131   : > { %4139 = vmatprep.subr.bf16.mxu0 %v4745_v1  ;;  %4231 = vmatprep.mubr.msk.bf16.mxu1 %vm4746_vm2, %v4745_v1 }
 0x132   : > { %4235 = vmatprep.subr.bf16.mxu1 %v4745_v1 }
 0x13a   : > { %4136 = vmatmul.mubr.msk.bf16.vlgmr.msra.gmra.mrb[4].mxu0 %vm242_vm3, %v5105_v38 }
 0x13b   : > { %4140 = vmatpush3.bf16.msra.mxu0 %v5024_v10  ;;  %4232 = vmatmul.mubr.msk.bf16.vlgmr.msra.gmra.mrb[4].mxu1 %vm242_vm3, %v5187_v8 }
 0x13c   : > { %4236 = vmatpush3.bf16.msra.mxu1 %v5024_v10  ;;  %4141 = vmatprep.mubr.msk.bf16.mxu0 %vm4746_vm2, %v4745_v1  ;;  %v3727_v10 = vcombine.low %v3723_v58, %v3726_v2 }
 0x13d   : > { %4145 = vmatprep.subr.bf16.mxu0 %v4745_v1  ;;  %4237 = vmatprep.mubr.msk.bf16.mxu1 %vm4746_vm2, %v4745_v1 }
 0x13e   : > { %4241 = vmatprep.subr.bf16.mxu1 %v4745_v1  ;;  %v2608_v11 = vshrl.u32 %v3727_v10, 16  ;;  %v2611_v12 = vshll.u32 %v3727_v10, 16 }
 0x140   : > { %v2610_v13 = vrot.slane %v2608_v11, 1  ;;  %v2613_v14 = vrot.slane %v2611_v12, 2 }
 0x146   : > { %4142 = vmatmul.mubr.msk.bf16.vlgmr.msra.gmra.mrb[4].mxu0 %vm242_vm3, %v5131_v45 }
 0x147   : > { %4146 = vmatpush3.bf16.msra.mxu0 %v5043_v15  ;;  %4238 = vmatmul.mubr.msk.bf16.vlgmr.msra.gmra.mrb[4].mxu1 %vm242_vm3, %v3717_v34 }
 0x148   : > { %4242 = vmatpush3.bf16.msra.mxu1 %v5043_v15  ;;  %4147 = vmatprep.mubr.msk.bf16.mxu0 %vm4746_vm2, %v4745_v1  ;;  %v2614_v15 = vor.u32 %v2613_v14, %v2610_v13 }
 0x149   : > { %4151 = vmatprep.subr.bf16.mxu0 %v4745_v1  ;;  %4243 = vmatprep.mubr.msk.bf16.mxu1 %vm4746_vm2, %v4745_v1 }
 0x14a   : > { %4247 = vmatprep.subr.bf16.mxu1 %v4745_v1 }
 0x152   : > { %4148 = vmatmul.mubr.msk.bf16.vlgmr.msra.gmra.mrb[4].mxu0 %vm242_vm3, %v5148_v53 }
 0x153   : > { %4152 = vmatpush3.bf16.msra.mxu0 %v5066_v24  ;;  %4244 = vmatmul.mubr.msk.bf16.vlgmr.msra.gmra.mrb[4].mxu1 %vm242_vm3, %v2509_v57 }
 0x154   : > { %4248 = vmatpush3.bf16.msra.mxu1 %v5066_v24  ;;  %4153 = vmatprep.mubr.msk.bf16.mxu0 %vm4746_vm2, %v4745_v1  ;;  %v3219_v24 = vrot.slane %v3217_v22, 1  ;;  %v3379_v22 = vld [vmem:[#allocation2] sm:$0x1] }
 0x155   : > { %4157 = vmatprep.subr.bf16.mxu0 %v4745_v1  ;;  %4249 = vmatprep.mubr.msk.bf16.mxu1 %vm4746_vm2, %v4745_v1 }
 0x156   : > { %4253 = vmatprep.subr.bf16.mxu1 %v4745_v1  ;;  %v3220_v25 = vor.u32 %v3219_v24, %v3215_v23 }
 0x15e   : > { %4154 = vmatmul.mubr.msk.bf16.vlgmr.msra.gmra.mrb[4].mxu0 %vm242_vm3, %v5170_v61 }
 0x15f   : > { %4158 = vmatpush3.bf16.msra.mxu0 %v5088_v31  ;;  %4250 = vmatmul.mubr.msk.bf16.vlgmr.msra.gmra.mrb[4].mxu1 %vm242_vm3, %v2558_v9 }
 0x160   : > { %4254 = vmatpush3.bf16.msra.mxu1 %v5088_v31  ;;  %4159 = vmatprep.mubr.msk.bf16.mxu0 %vm4746_vm2, %v4745_v1  ;;  %v3319_v31 = vshrl.u32 %v3753_v30, 16 }
 0x161   : > { %4163 = vmatprep.subr.bf16.mxu0 %v4745_v1  ;;  %4255 = vmatprep.mubr.msk.bf16.mxu1 %vm4746_vm2, %v4745_v1 }
 0x162   : > { %4259 = vmatprep.subr.bf16.mxu1 %v4745_v1  ;;  %v3321_v33 = vrot.slane %v3319_v31, 1 }
 0x164   : > { %v3325_v36 = vor.u32 %v3324_v35, %v3321_v33 }
 0x16a   : > { %4160 = vmatmul.mubr.msk.bf16.vlgmr.msra.gmra.mrb[4].mxu0 %vm242_vm3, %v5187_v8 }
 0x16b   : > { %4164 = vmatpush3.bf16.msra.mxu0 %v5108_v39  ;;  %4256 = vmatmul.mubr.msk.bf16.vlgmr.msra.gmra.mrb[4].mxu1 %vm242_vm3, %v2614_v15 }
 0x16c   : > { %4260 = vmatpush3.bf16.msra.mxu1 %v5108_v39  ;;  %4165 = vmatprep.mubr.msk.bf16.mxu0 %vm4746_vm2, %v4745_v1 }
 0x16d   : > { %4169 = vmatprep.subr.bf16.mxu0 %v4745_v1  ;;  %4261 = vmatprep.mubr.msk.bf16.mxu1 %vm4746_vm2, %v4745_v1 }
 0x16e   : > { %4265 = vmatprep.subr.bf16.mxu1 %v4745_v1 }
 0x176   : > { %4166 = vmatmul.mubr.msk.bf16.vlgmr.msra.gmra.mrb[4].mxu0 %vm242_vm3, %v3717_v34 }
 0x177   : > { %4170 = vmatpush3.bf16.msra.mxu0 %v5128_v44  ;;  %4262 = vmatmul.mubr.msk.bf16.vlgmr.msra.gmra.mrb[4].mxu1 %vm242_vm3, %v3743_v20 }
 0x178   : > { %4266 = vmatpush3.bf16.msra.mxu1 %v5128_v44  ;;  %4171 = vmatprep.mubr.msk.bf16.mxu0 %vm4746_vm2, %v4745_v1 }
 0x179   : > { %4175 = vmatprep.subr.bf16.mxu0 %v4745_v1  ;;  %4267 = vmatprep.mubr.msk.bf16.mxu1 %vm4746_vm2, %v4745_v1 }
 0x17a   : > { %4271 = vmatprep.subr.bf16.mxu1 %v4745_v1 }
 0x182   : > { %4172 = vmatmul.mubr.msk.bf16.vlgmr.msra.gmra.mrb[4].mxu0 %vm242_vm3, %v2509_v57 }
 0x183   : > { %4176 = vmatpush3.bf16.msra.mxu0 %v5151_v54  ;;  %4268 = vmatmul.mubr.msk.bf16.vlgmr.msra.gmra.mrb[4].mxu1 %vm242_vm3, %v3220_v25  ;;  %v3389_v25 = vld [vmem:[%s5453_s2] sm:$0xff] (!%p3755_p0) }
 0x184   : > { %4272 = vmatpush3.bf16.msra.mxu1 %v5151_v54  ;;  %4177 = vmatprep.mubr.msk.bf16.mxu0 %vm4746_vm2, %v4745_v1  ;;  %v4291_v28 = vpack.c.bf16 (!%p3755_p0), %v3390_v26, %v3389_v25 }
 0x185   : > { %4181 = vmatprep.subr.bf16.mxu0 %v4745_v1  ;;  %4273 = vmatprep.mubr.msk.bf16.mxu1 %vm4746_vm2, %v4745_v1 }
 0x186   : > { %4277 = vmatprep.subr.bf16.mxu1 %v4745_v1 }
 0x18e   : > { %4178 = vmatmul.mubr.msk.bf16.vlgmr.msra.gmra.mrb[4].mxu0 %vm242_vm3, %v2558_v9 }
 0x18f   : > { %4182 = vmatpush3.bf16.msra.mxu0 %v5173_v0  ;;  %4274 = vmatmul.mubr.msk.bf16.vlgmr.msra.gmra.mrb[4].mxu1 %vm242_vm3, %v3269_v29  ;;  %v4749_v29 = vmov (!%p3755_p0), 0.0  }
 0x190   : > { %4278 = vmatpush3.bf16.msra.mxu1 %v5173_v0  ;;  %4183 = vmatprep.mubr.msk.bf16.mxu0 %vm4746_vm2, %v4745_v1 }
 0x191   : > { %4279 = vmatprep.mubr.msk.bf16.mxu1 %vm4746_vm2, %v4745_v1  ;;  %4290 = vmatprep.subr.bf16.mxu0 (!%p3755_p0), %v4747_v27 }
 0x19a   : > { %4184 = vmatmul.mubr.msk.bf16.vlgmr.msra.gmra.mrb[4].mxu0 %vm242_vm3, %v2614_v15 }
 0x19b   : > { %4280 = vmatmul.mubr.msk.bf16.vlgmr.msra.gmra.mrb[4].mxu1 %vm242_vm3, %v3325_v36  ;;  %4287 = vmatprep.mubr.msk.f32.mxu0 (!%p3755_p0), %vm4748_vm6, %v4749_v29 }
 0x19c   : > { %4292 = vmatpush3.bf16.msra.mxu0 (!%p3755_p0), %v4291_v28 }
 0x1b1   : > { %v1229_v37 = vpop.f32.mrb[0].mxu0 }
 0x1b2   : > { %v1236_v38 = vmax.f32 %v1229_v37, 0.0  ;;  %v1941_v39 = vpop.f32.mrb[0].mxu1  ;;  %v3993_v40 = vpop.f32.mrb[1].mxu0 }
 0x1b3   : > { %v1948_v41 = vmax.f32 %v1941_v39, 0.0  ;;  %v4089_v42 = vpop.f32.mrb[1].mxu1  ;;  %v1232_v43 = vpop.f32.mrb[2].mxu0 }
 0x1b4   : > { %v1238_v44 = vsel %vm1237_vm4, %v1236_v38, 0.0  ;;  %v1944_v45 = vpop.f32.mrb[2].mxu1  ;;  %v3994_v47 = vpop.f32.mrb[3].mxu0 }
 0x1b5   : > { %v1239_v1 = vrot.slane %v1238_v44, 4  ;;  %v1949_v48 = vsel %vm1237_vm4, %v1948_v41, 0.0  ;;  %v4090_v49 = vpop.f32.mrb[3].mxu1 }
 0x1b6   : > { %v1950_v50 = vrot.slane %v1949_v48, 4 }
 0x1b7   : > { %v1240_v53 = vadd.f32 %v1239_v1, %v1238_v44 }
 0x1b8   : > { %v1951_v54 = vadd.f32 %v1950_v50, %v1949_v48 }
 0x1b9   : > { %v1241_v55 = vrot.slane %v1240_v53, 2 }
 0x1ba   : > { %v1952_v56 = vrot.slane %v1951_v54, 2 }
 0x1bb   : > { %v1242_v59 = vadd.f32 %v1241_v55, %v1240_v53 }
 0x1bc   : > { %v1953_v60 = vadd.f32 %v1952_v56, %v1951_v54 }
 0x1bd   : > { %v1243_v61 = vrot.slane %v1242_v59, 1 }
 0x1be   : > { %v1954_v62 = vrot.slane %v1953_v60, 1 }
 0x1bf   : > { %v1244_v0 = vadd.f32 %v1243_v61, %v1242_v59 }
 0x1c0   : > { %v1955_v4 = vadd.f32 %v1954_v62, %v1953_v60 }
 0x1c2   : > { %v1956_v5 = vadd.f32 %v1955_v4, %v1244_v0 }
 0x26d   : > { %v2652_v6 = vpop.f32.mrb[4].mxu0 }
 0x26e   : > { %v2659_v7 = vmax.f32 %v2652_v6, 0.0  ;;  %v3363_v8 = vpop.f32.mrb[4].mxu1  ;;  %v4185_v3 = vpop.f32.mrb[5].mxu0 }
 0x26f   : > { %v3370_v18 = vmax.f32 %v3363_v8, 0.0  ;;  %v4281_v21 = vpop.f32.mrb[5].mxu1  ;;  %v2655_v34 = vpop.f32.mrb[6].mxu0 }
 0x270   : > { %v2660_v46 = vsel %vm1237_vm4, %v2659_v7, 0.0  ;;  %v3366_v51 = vpop.f32.mrb[6].mxu1  ;;  %v4186_v52 = vpop.f32.mrb[7].mxu0 }
 0x271   : > { %v2661_v57 = vrot.slane %v2660_v46, 4  ;;  %v3371_v58 = vsel %vm1237_vm4, %v3370_v18, 0.0  ;;  %v4282_v63 = vpop.f32.mrb[7].mxu1 }
 0x272   : > { %v3372_v2 = vrot.slane %v3371_v58, 4 }
 0x273   : > { %v2662_v9 = vadd.f32 %v2661_v57, %v2660_v46 }
 0x274   : > { %v3373_v10 = vadd.f32 %v3372_v2, %v3371_v58 }
 0x275   : > { %v2663_v11 = vrot.slane %v2662_v9, 2 }
 0x276   : > { %v3374_v12 = vrot.slane %v3373_v10, 2 }
 0x277   : > { %v2664_v13 = vadd.f32 %v2663_v11, %v2662_v9 }
 0x278   : > { %v3375_v14 = vadd.f32 %v3374_v12, %v3373_v10 }
 0x279   : > { %v2665_v15 = vrot.slane %v2664_v13, 1 }
 0x27a   : > { %v3376_v16 = vrot.slane %v3375_v14, 1 }
 0x27b   : > { %v2666_v17 = vadd.f32 %v2665_v15, %v2664_v13 }
 0x27c   : > { %v3377_v20 = vadd.f32 %v3376_v16, %v3375_v14 }
 0x27d   : > { %v2667_v19 = vadd.f32 %v2666_v17, %v1956_v5  ;;  %3386 = sbr.rel (%p3755_p0) target bundleno = 868 (0x364), region = 44 }
 0x27f   : > { %v3378_v23 = vadd.f32 %v3377_v20, %v2667_v19 }
 0x281   : > { %v3380_v24 = vadd.f32 %v3379_v22, %v3378_v23 }
 0x283   : > { %3382 = vst.msk [vmem:[#allocation2] sm:$0x1] %vm3381_vm5, %v3380_v24 }
 0x28a   : > { %v3387_v30 = vld [vmem:[#allocation2] sm:$0x1] }
 0x28b   : > { %v3388_v31 = vmul.f32 0.015625, %v3387_v30 }
 0x28d   : > { %4288 = vmatmul.mubr.msk.f32.vlgmr.msra.gmra.mrb[0].mxu0 %vm1237_vm4, %v3388_v31 }
 0x360   : > { %v3461_v33 = vpop.f32.mrb[0].mxu0 }
 0x361   : > { %v3462_v35 = vadd.f32 %v3461_v33, %v3391_v32  ;;  %v4289_v36 = vpop.f32.mrb[1].mxu0 }
 0x363   : > { %3466 = vst.msk [vmem:[%s4853_s12] sm:$0x1] %vm3465_vm7, %v3462_v35 }
 0x364 PF: > { %s3757_s9 = sshll.u32 %s4730_s19, 4  ;;  %s3480_s14 = sshll.u32 %s4853_s12, 4  ;;  %s3481_s14 = int_to_ptr.vmem [resolvable:$true] %s3480_s14 }
 0x365   : > { %s5401_s13 = scalar_lea.hbm %s5455_s4, %s3757_s9  ;;  %s3468_s23 = scalar_lea.sflag [#allocation4], %s200_s6 }
 0x366   : > { %s4648_s24 = scalar_lea.vmem %s3481_s14, 16  ;;  %s4750_s29 = smov [#allocation3]  }
 0x367   : > { %p4649_p1 = scmp.ne.s32.totalorder %s3481_s14, %s4648_s24  ;;  %s4652_s30 = sshll.u32 %s4750_s29, 4  ;;  %s4653_s30 = int_to_ptr.vmem [resolvable:$false] %s4652_s30 }
 0x368   : > { %s4654_s7 = scalar_lea.vmem %s4653_s30, 32  ;;  %p4655_p5 = scmp.lt.s32.totalorder %s3481_s14, %s4653_s30 }
 0x369   : > { %p4650_p2 = pnand %p4649_p1, %p4825_p3  ;;  %p4656_p6 = scmp.lt.s32.totalorder %s4654_s7, %s4648_s24 }
 0x36b   : > { %p4651_p4 = pneg %p4650_p2  ;;  %p4657_p7 = por %p4656_p6, %p4655_p5 }
 0x36d   : > { %p4658_p8 = pnand %p4657_p7, %p4651_p4 }
 0x36f   : > { %4661 = shalt.err (!%p4658_p8)
}
 0x370   : > { %s4662_s19 = scalar_lea.hbm %s5401_s13, 16  ;;  %s4666_s18 = scalar_lea.hbm %s5455_s4, 32 }
 0x371   : > { %p4663_p10 = scmp.ne.s32.totalorder %s5401_s13, %s4662_s19  ;;  %p4667_p13 = scmp.lt.u32.totalorder %s5401_s13, %s5455_s4 }
 0x372   : > { %p4668_p0 = scmp.lt.u32.totalorder %s4666_s18, %s4662_s19  ;;  %p4670_p2 = scmp.lt.u32.totalorder %s4662_s19, %s5401_s13 }
 0x373   : > { %p4664_p11 = pnand %p4663_p10, %p4825_p3 }
 0x374   : > { %p4669_p1 = por %p4668_p0, %p4667_p13 }
 0x375   : > { %p4665_p12 = pneg %p4664_p11 }
 0x376   : > { %p4671_p4 = por %p4670_p2, %p4669_p1 }
 0x378   : > { %p4672_p5 = pnand %p4671_p4, %p4665_p12 }
 0x37a   : > { %4675 = shalt.err (!%p4672_p5)
}
 0x37b   : > { %4534 = dma.vmem_to_hbm [thread:$0]  (%p4825_p3), %s3481_s14, 16, %s5401_s13, %s3468_s23  }
 0x37c PF: > { %p4540_p6 = scmp.ge.s32.totalorder %s4742_s22, 2  ;;  %s3492_s10 = sand.u32 1, %s4714_s15  }
 0x37d   : > { %s3493_s11 = scalar_lea.sflag [#allocation4], %s3492_s10 }
 0x37e   : > { %p4537_p7 = pnand %p4540_p6, %p4835_p9 }
 0x380   : > { %4709 = dma.done.wait (!%p4537_p7), %s3493_s11, 16  }
 0x381   : > { %4711 = vsyncadd (!%p4537_p7), %s3493_s11, 4294967280  ;;  %s17_s22 = sadd.s32 1, %s4742_s22   ;;  %s5458_s15 = smov %s4718_s16 }
 0x382   : > { %p14_p8 = scmp.ge.s32.totalorder %s17_s22, 6   ;;  %s5459_s16 = smov %s4722_s17 }
 0x383   : > { %s5460_s17 = smov %s4843_s5  ;;  %s5461_s18 = smov %s4734_s20 }
 0x384   : > { %s5462_s19 = smov %s4738_s21  ;;  %s5463_s20 = smov %s5466_s25 }
 0x385   : > { %s5464_s21 = smov %s5470_s26  ;;  %16 = sbr.rel (!%p14_p8) target bundleno = 5 (0x5), region = 101 }
 0x38c   :  { %3497 = vsyncpa [#allocation4], 1 }
 0x38d   :  { %3499 = vsyncpa [#allocation4 + $0x1], 1 }

</bundles_post_ra>
